<compile_context>
chip_gen: v5e
topology: v5e:2x2
jax: 0.10.0
libtpu: 0.0.40
codegen_flags: <defaults>
</compile_context>

<pallas_src>
import functools

import jax
import jax.numpy as jnp
from jax import lax
from jax.experimental import pallas as pl
from jax.experimental.pallas import tpu as pltpu

MARGIN = 0.25
GAMMA = 32.0
NEG_INF = -99999999.0
COS_KEY = "feat"

# Fixed logsumexp offsets (upper bounds of the respective logits):
#   logit_p = -GAMMA * dist           <= GAMMA             -> C_P
#   logit_n =  GAMMA * (dist+MARGIN)  <= GAMMA*(1+MARGIN)   -> C_N
C_P = GAMMA
C_N = GAMMA * (1.0 + MARGIN)


def cosface_kernel(xr_ref, xc_ref, tr_ref, tc_ref, sp_ref, sn_ref, *, n_valid):
    """One (row-block, col-block) tile of the CosFace partial sums.

    xr_ref: (TM, D)  f32 normalized embeddings, row block
    xc_ref: (TN, D)  f32 normalized embeddings, col block
    tr_ref: (TM, 1)  i32 labels, row block
    tc_ref: (1, TN)  i32 labels, col block (lane-major)
    sp_ref: (TM,128) f32 OUTPUT accumulator: sum over cols of exp(logit_p - C_P)
    sn_ref: (TM,128) f32 OUTPUT accumulator: sum over cols of exp(logit_n - C_N)

    The output blocks are revisited for every col block (index_map constant in
    j), so they act as VMEM-resident accumulators; zeroed at j == 0.
    """
    tm = xr_ref.shape[0]
    tn = xc_ref.shape[0]
    i = pl.program_id(0)
    j = pl.program_id(1)

    # ---- init resident output accumulators at the start of each col sweep ----
    @pl.when(j == 0)
    def _():
        sp_ref[...] = jnp.zeros_like(sp_ref)
        sn_ref[...] = jnp.zeros_like(sn_ref)

    # ---- cosine-similarity tile on the MXU (no transposed copy) ----
    dist = lax.dot_general(
        xr_ref[...], xc_ref[...],
        dimension_numbers=(((1,), (1,)), ((), ())),
        preferred_element_type=jnp.float32)                      # (TM, TN)

    # ---- masks from small broadcast operands (no full-tile i32 iota) ----
    eq = tr_ref[...] == tc_ref[...]                              # (TM,1)==(1,TN) -> (TM,TN)
    row_g = i * tm + lax.broadcasted_iota(jnp.int32, (tm, 1), 0)  # (TM,1) global row idx
    col_g = j * tn + lax.broadcasted_iota(jnp.int32, (1, tn), 1)  # (1,TN) global col idx
    not_diag = row_g != col_g                                    # (TM,TN) broadcast compare
    valid = col_g < n_valid                                      # (1,TN): mask padded cols

    pos_mask = eq & not_diag & valid
    neg_mask = jnp.logical_not(eq) & valid

    # ---- fixed-offset exp tiles (arguments are in [-2*GAMMA, ~0]: no overflow,
    #      no underflow to zero for genuine entries) ----
    e_p = jnp.where(pos_mask, jnp.exp(-GAMMA * (dist + 1.0)), 0.0)   # exp(logit_p - C_P)
    e_n = jnp.where(neg_mask, jnp.exp(GAMMA * (dist - 1.0)), 0.0)    # exp(logit_n - C_N)

    # ---- fold (TM, TN) -> (TM, 128) with aligned 128-lane slices: pure VPU
    #      vreg adds, no cross-lane (XLU) reduction in the kernel at all ----
    acc_p = e_p[:, 0:128]
    acc_n = e_n[:, 0:128]
    for k in range(1, tn // 128):
        acc_p = acc_p + e_p[:, k * 128:(k + 1) * 128]
        acc_n = acc_n + e_n[:, k * 128:(k + 1) * 128]

    sp_ref[...] += acc_p
    sn_ref[...] += acc_n


def cosface_loss(embedding_dict, targets, *, block_m=256, block_n=1024,
                 vmem_limit_bytes=None):
    """embedding_dict: {'feat': (N, D) f32}; targets: (N,) int labels.

    block_m / block_n: row / col tile sizes (multiples of 128), clamped to the
    padded N.  Defaults (256, 1024) fit the default scoped-VMEM limit on
    v5e/v6e/v7x; v6e can go to (512, 2048) with vmem_limit_bytes raised.
    """
    emb = embedding_dict[COS_KEY].astype(jnp.float32)
    n, d = emb.shape

    # Normalize once in XLA (hoisted out of the tiled kernel).
    nrm = jnp.sqrt(jnp.sum(emb * emb, axis=1, keepdims=True))
    xn = emb / jnp.maximum(nrm, 1e-12)
    tgt = targets.astype(jnp.int32).reshape(n)

    # ---- tile sizes: multiples of 128, tn a multiple of tm, clamp to N ----
    n128 = ((n + 127) // 128) * 128
    tm = min(max(128, (int(block_m) // 128) * 128), n128)
    tn = min(max(128, (int(block_n) // 128) * 128), n128)
    tn = max(tm, (tn // tm) * tm)
    n_pad = ((n + tn - 1) // tn) * tn

    if n_pad != n:
        xn = jnp.pad(xn, ((0, n_pad - n), (0, 0)))
        tgt = jnp.pad(tgt, (0, n_pad - n), constant_values=-1)

    t_row = tgt.reshape(n_pad, 1)
    t_col = tgt.reshape(1, n_pad)

    grid_m = n_pad // tm
    grid_n = n_pad // tn

    kernel = functools.partial(cosface_kernel, n_valid=n)

    cp_kwargs = dict(dimension_semantics=("parallel", "arbitrary"))
    if vmem_limit_bytes is not None:
        cp_kwargs["vmem_limit_bytes"] = int(vmem_limit_bytes)

    sp_tiles, sn_tiles = pl.pallas_call(
        kernel,
        out_shape=(jax.ShapeDtypeStruct((n_pad, 128), jnp.float32),
                   jax.ShapeDtypeStruct((n_pad, 128), jnp.float32)),
        grid_spec=pltpu.PrefetchScalarGridSpec(
            num_scalar_prefetch=0,
            grid=(grid_m, grid_n),
            in_specs=[
                pl.BlockSpec((tm, d), lambda i, j: (i, 0)),   # row embeddings
                pl.BlockSpec((tn, d), lambda i, j: (j, 0)),   # col embeddings
                pl.BlockSpec((tm, 1), lambda i, j: (i, 0)),   # row labels
                pl.BlockSpec((1, tn), lambda i, j: (0, j)),   # col labels (lane-major)
            ],
            out_specs=[
                pl.BlockSpec((tm, 128), lambda i, j: (i, 0)),  # resident accumulators,
                pl.BlockSpec((tm, 128), lambda i, j: (i, 0)),  # lane-dense stores
            ],
        ),
        compiler_params=pltpu.CompilerParams(**cp_kwargs),
    )(xn, xn, t_row, t_col)

    # ---- tiny scalar epilogue in XLA: per-row reduce, log, softplus, mean ----
    tiny = jnp.float32(1e-30)
    sp = jnp.sum(sp_tiles[:n], axis=1)
    sn = jnp.sum(sn_tiles[:n], axis=1)
    lse_p = jnp.where(sp > 0, C_P + jnp.log(jnp.maximum(sp, tiny)), NEG_INF)
    lse_n = jnp.where(sn > 0, C_N + jnp.log(jnp.maximum(sn, tiny)), NEG_INF)
    return jnp.mean(jax.nn.softplus(lse_p + lse_n))


def _reference_loss(emb, tgt):
    """Pure-JAX mirror of the PyTorch module (for a sanity check)."""
    emb = emb.astype(jnp.float32)
    xn = emb / jnp.maximum(
        jnp.sqrt(jnp.sum(emb * emb, axis=1, keepdims=True)), 1e-12)
    dist = jnp.matmul(xn, xn.T, precision=lax.Precision.HIGHEST)
    n = emb.shape[0]
    eq = (tgt[:, None] == tgt[None, :]).astype(jnp.float32)
    is_pos = eq - jnp.eye(n, dtype=jnp.float32)
    is_neg = 1.0 - eq
    s_p = dist * is_pos
    s_n = dist * is_neg
    logit_p = -GAMMA * s_p + NEG_INF * (1.0 - is_pos)
    logit_n = GAMMA * (s_n + MARGIN) + NEG_INF * (1.0 - is_neg)

    def lse(x):
        m = jnp.max(x, axis=1, keepdims=True)
        return (m + jnp.log(jnp.sum(jnp.exp(x - m), axis=1, keepdims=True)))[:, 0]

    return jnp.mean(jax.nn.softplus(lse(logit_p) + lse(logit_n)))


if __name__ == "__main__":
    key = jax.random.PRNGKey(0)
    k_emb, k_tgt = jax.random.split(key)

    # Small but multi-tile: N=600 -> (tm=128, tn=256) pads to 768 -> 6x3 grid
    # (exercises col-block streaming, the lane-fold loop and padded columns).
    N, D = 600, 32
    feat = jax.random.normal(k_emb, (N, D), dtype=jnp.float32)
    targets = jax.random.randint(k_tgt, (N,), 0, 4, dtype=jnp.int32)

    ref = _reference_loss(feat, targets)
    tol = 1e-2 * jnp.maximum(1.0, jnp.abs(ref))

    # Run 1: small rectangular tiles -> 6x3 grid.
    loss_small = cosface_loss({"feat": feat}, targets, block_m=128, block_n=256)
    jax.block_until_ready(loss_small)
    diff = jnp.abs(loss_small - ref)
    assert diff < tol, ("small tiles", float(loss_small), float(ref), float(diff))

    # Run 2: default tiles (clamped to padded N) -> 4x2 grid.
    loss_default = cosface_loss({"feat": feat}, targets)
    jax.block_until_ready(loss_default)
    diff = jnp.abs(loss_default - ref)
    assert diff < tol, ("default tiles", float(loss_default), float(ref), float(diff))

    print("KERNEL_OK")
</pallas_src>

<mosaic_0001>
module attributes {stable_mosaic.version = 11 : i64} {
  func.func @cosface_kernel(%arg0: i32, %arg1: i32, %arg2: memref<128x32xf32, #tpu.memory_space<vmem>>, %arg3: memref<256x32xf32, #tpu.memory_space<vmem>>, %arg4: memref<128x1xi32, #tpu.memory_space<vmem>>, %arg5: memref<1x256xi32, #tpu.memory_space<vmem>>, %arg6: memref<128x128xf32, #tpu.memory_space<vmem>>, %arg7: memref<128x128xf32, #tpu.memory_space<vmem>>) attributes {dimension_semantics = [#tpu.dimension_semantics<parallel>, #tpu.dimension_semantics<arbitrary>], iteration_bounds = array<i64: 6, 3>, scalar_prefetch = 0 : i64, scratch_operands = 0 : i64, tpu.core_type = #tpu.core_type<tc>, window_params = [{transform_indices = @transform_0, window_bounds = array<i64: 128, 32>}, {transform_indices = @transform_1, window_bounds = array<i64: 256, 32>}, {transform_indices = @transform_2, window_bounds = array<i64: 128, 1>}, {transform_indices = @transform_3, window_bounds = array<i64: 1, 256>}, {transform_indices = @transform_4, window_bounds = array<i64: 128, 128>}, {transform_indices = @transform_5, window_bounds = array<i64: 128, 128>}]} {
    %c0_i32 = arith.constant 0 : i32
    %0 = arith.cmpi eq, %arg1, %c0_i32 : i32
    %1 = arith.extui %0 : i1 to i32
    %c0_i32_0 = arith.constant 0 : i32
    %2 = arith.cmpi ne, %1, %c0_i32_0 : i32
    scf.if %2 {
      %cst_23 = arith.constant 0.000000e+00 : f32
      %56 = vector.broadcast %cst_23 : f32 to vector<128x128xf32>
      %c0_24 = arith.constant 0 : index
      %c0_25 = arith.constant 0 : index
      %57 = vector.load %arg6[%c0_24, %c0_25] : memref<128x128xf32, #tpu.memory_space<vmem>>, vector<128x128xf32>
      tpu.vector_store %arg6[%c0_24, %c0_25], %56 {strides = array<i32>} : memref<128x128xf32, #tpu.memory_space<vmem>>, vector<128x128xf32>,
      %cst_26 = arith.constant 0.000000e+00 : f32
      %58 = vector.broadcast %cst_26 : f32 to vector<128x128xf32>
      %c0_27 = arith.constant 0 : index
      %c0_28 = arith.constant 0 : index
      %59 = vector.load %arg7[%c0_27, %c0_28] : memref<128x128xf32, #tpu.memory_space<vmem>>, vector<128x128xf32>
      tpu.vector_store %arg7[%c0_27, %c0_28], %58 {strides = array<i32>} : memref<128x128xf32, #tpu.memory_space<vmem>>, vector<128x128xf32>,
    } else {
    }
    %c0 = arith.constant 0 : index
    %c0_1 = arith.constant 0 : index
    %3 = vector.load %arg2[%c0, %c0_1] : memref<128x32xf32, #tpu.memory_space<vmem>>, vector<128x32xf32>
    %c0_2 = arith.constant 0 : index
    %c0_3 = arith.constant 0 : index
    %4 = vector.load %arg3[%c0_2, %c0_3] : memref<256x32xf32, #tpu.memory_space<vmem>>, vector<256x32xf32>
    %cst = arith.constant dense<0.000000e+00> : vector<128x256xf32>
    %5 = tpu.matmul %3, %4, %cst {dimension_numbers = #tpu.dot_dimension_numbers<[1], [1], [0], [0], [0, 0, 1, 0], [], []>} : vector<128x32xf32>, vector<256x32xf32>, vector<128x256xf32> -> vector<128x256xf32>
    %c0_4 = arith.constant 0 : index
    %c0_5 = arith.constant 0 : index
    %6 = vector.load %arg4[%c0_4, %c0_5] : memref<128x1xi32, #tpu.memory_space<vmem>>, vector<128x1xi32>
    %c0_6 = arith.constant 0 : index
    %c0_7 = arith.constant 0 : index
    %7 = vector.load %arg5[%c0_6, %c0_7] : memref<1x256xi32, #tpu.memory_space<vmem>>, vector<1x256xi32>
    %8 = vector.broadcast %6 : vector<128x1xi32> to vector<128x256xi32>
    %9 = vector.broadcast %7 : vector<1x256xi32> to vector<128x256xi32>
    %10 = arith.cmpi eq, %8, %9 : vector<128x256xi32>
    %c128_i32 = arith.constant 128 : i32
    %11 = arith.muli %arg0, %c128_i32 : i32
    %12 = tpu.iota {dimensions = array<i32: 0>} : vector<128x1xi32>
    %13 = vector.broadcast %11 : i32 to vector<128x1xi32>
    %14 = arith.addi %13, %12 : vector<128x1xi32>
    %c256_i32 = arith.constant 256 : i32
    %15 = arith.muli %arg1, %c256_i32 : i32
    %16 = tpu.iota {dimensions = array<i32: 1>} : vector<1x256xi32>
    %17 = vector.broadcast %15 : i32 to vector<1x256xi32>
    %18 = arith.addi %17, %16 : vector<1x256xi32>
    %19 = vector.broadcast %14 : vector<128x1xi32> to vector<128x256xi32>
    %20 = vector.broadcast %18 : vector<1x256xi32> to vector<128x256xi32>
    %21 = arith.cmpi ne, %19, %20 : vector<128x256xi32>
    %c600_i32 = arith.constant 600 : i32
    %22 = vector.broadcast %c600_i32 : i32 to vector<1x256xi32>
    %23 = arith.cmpi slt, %18, %22 : vector<1x256xi32>
    %24 = arith.andi %10, %21 : vector<128x256xi1>
    %25 = vector.broadcast %23 : vector<1x256xi1> to vector<128x256xi1>
    %26 = arith.andi %24, %25 : vector<128x256xi1>
    %cst_8 = arith.constant dense<true> : vector<128x256xi1>
    %27 = arith.xori %10, %cst_8 : vector<128x256xi1>
    %28 = vector.broadcast %23 : vector<1x256xi1> to vector<128x256xi1>
    %29 = arith.andi %27, %28 : vector<128x256xi1>
    %cst_9 = arith.constant 1.000000e+00 : f32
    %30 = vector.broadcast %cst_9 : f32 to vector<128x256xf32>
    %31 = arith.addf %5, %30 : vector<128x256xf32>
    %cst_10 = arith.constant -3.200000e+01 : f32
    %32 = vector.broadcast %cst_10 : f32 to vector<128x256xf32>
    %33 = arith.mulf %32, %31 : vector<128x256xf32>
    %34 = math.exp %33 : vector<128x256xf32>
    %cst_11 = arith.constant 0.000000e+00 : f32
    %35 = vector.broadcast %cst_11 : f32 to vector<128x256xf32>
    %36 = arith.select %26, %34, %35 : vector<128x256xi1>, vector<128x256xf32>
    %cst_12 = arith.constant 1.000000e+00 : f32
    %37 = vector.broadcast %cst_12 : f32 to vector<128x256xf32>
    %38 = arith.subf %5, %37 : vector<128x256xf32>
    %cst_13 = arith.constant 3.200000e+01 : f32
    %39 = vector.broadcast %cst_13 : f32 to vector<128x256xf32>
    %40 = arith.mulf %39, %38 : vector<128x256xf32>
    %41 = math.exp %40 : vector<128x256xf32>
    %cst_14 = arith.constant 0.000000e+00 : f32
    %42 = vector.broadcast %cst_14 : f32 to vector<128x256xf32>
    %43 = arith.select %29, %41, %42 : vector<128x256xi1>, vector<128x256xf32>
    %44 = vector.extract_strided_slice %36 {offsets = [0, 0], sizes = [128, 128], strides = [1, 1]} : vector<128x256xf32> to vector<128x128xf32>
    %45 = vector.extract_strided_slice %43 {offsets = [0, 0], sizes = [128, 128], strides = [1, 1]} : vector<128x256xf32> to vector<128x128xf32>
    %46 = vector.extract_strided_slice %36 {offsets = [0, 128], sizes = [128, 128], strides = [1, 1]} : vector<128x256xf32> to vector<128x128xf32>
    %47 = arith.addf %44, %46 : vector<128x128xf32>
    %48 = vector.extract_strided_slice %43 {offsets = [0, 128], sizes = [128, 128], strides = [1, 1]} : vector<128x256xf32> to vector<128x128xf32>
    %49 = arith.addf %45, %48 : vector<128x128xf32>
    %c0_15 = arith.constant 0 : index
    %c0_16 = arith.constant 0 : index
    %50 = vector.load %arg6[%c0_15, %c0_16] : memref<128x128xf32, #tpu.memory_space<vmem>>, vector<128x128xf32>
    %51 = arith.addf %50, %47 : vector<128x128xf32>
    %c0_17 = arith.constant 0 : index
    %c0_18 = arith.constant 0 : index
    %52 = vector.load %arg6[%c0_17, %c0_18] : memref<128x128xf32, #tpu.memory_space<vmem>>, vector<128x128xf32>
    tpu.vector_store %arg6[%c0_17, %c0_18], %51 {strides = array<i32>} : memref<128x128xf32, #tpu.memory_space<vmem>>, vector<128x128xf32>,
    %c0_19 = arith.constant 0 : index
    %c0_20 = arith.constant 0 : index
    %53 = vector.load %arg7[%c0_19, %c0_20] : memref<128x128xf32, #tpu.memory_space<vmem>>, vector<128x128xf32>
    %54 = arith.addf %53, %49 : vector<128x128xf32>
    %c0_21 = arith.constant 0 : index
    %c0_22 = arith.constant 0 : index
    %55 = vector.load %arg7[%c0_21, %c0_22] : memref<128x128xf32, #tpu.memory_space<vmem>>, vector<128x128xf32>
    tpu.vector_store %arg7[%c0_21, %c0_22], %54 {strides = array<i32>} : memref<128x128xf32, #tpu.memory_space<vmem>>, vector<128x128xf32>,
    return
  }
  func.func @transform_0(%arg0: i32, %arg1: i32) -> (i32, i32) {
    %c0_i32 = arith.constant 0 : i32
    %c0_i32_0 = arith.constant 0 : i32
    return %arg0, %c0_i32 : i32, i32
  }
  func.func @transform_1(%arg0: i32, %arg1: i32) -> (i32, i32) {
    %c0_i32 = arith.constant 0 : i32
    %c0_i32_0 = arith.constant 0 : i32
    return %arg1, %c0_i32 : i32, i32
  }
  func.func @transform_2(%arg0: i32, %arg1: i32) -> (i32, i32) {
    %c0_i32 = arith.constant 0 : i32
    %c0_i32_0 = arith.constant 0 : i32
    return %arg0, %c0_i32 : i32, i32
  }
  func.func @transform_3(%arg0: i32, %arg1: i32) -> (i32, i32) {
    %c0_i32 = arith.constant 0 : i32
    %c0_i32_0 = arith.constant 0 : i32
    return %c0_i32, %arg1 : i32, i32
  }
  func.func @transform_4(%arg0: i32, %arg1: i32) -> (i32, i32) {
    %c0_i32 = arith.constant 0 : i32
    %c0_i32_0 = arith.constant 0 : i32
    return %arg0, %c0_i32 : i32, i32
  }
  func.func @transform_5(%arg0: i32, %arg1: i32) -> (i32, i32) {
    %c0_i32 = arith.constant 0 : i32
    %c0_i32_0 = arith.constant 0 : i32
    return %arg0, %c0_i32 : i32, i32
  }
}

</mosaic_0001>

<bundles_post_ra>
// kernel: tpu_custom_call.1
= control target key start
LH: loop header
LB: loop body
LE: loop exit
PB: predicated region body
PF: predicated region fallthrough
CT: control target
= control target key end

     0   :  { %s3879_s0 = inlined_call_operand.vmem [shape: f32[768,32], index: 0, kind: input, shape index: {}]   ;;  %s3880_s1 = inlined_call_operand.vmem [shape: f32[768,32], index: 1, kind: input, shape index: {}]   ;;  %s3881_s2 = inlined_call_operand.vmem [shape: s32[768,1], index: 2, kind: input, shape index: {}]   ;;  %s3882_s3 = inlined_call_operand.vmem [shape: s32[1,768], index: 3, kind: input, shape index: {}]   ;;  %s3883_s4 = inlined_call_operand.hbm [shape: f32[768,128], index: 4, kind: output, shape index: {0}]   ;;  %s3884_s5 = inlined_call_operand.hbm [shape: f32[768,128], index: 5, kind: output, shape index: {1}]  }
   0x1   :  { %3892 = sst [smem:[#allocation12_spill]] %s3879_s0 }
   0x2   :  { %11 = vsyncpa [#allocation3], 0 }
   0x3   :  { %13 = vsyncpa [#allocation3 + $0x1], 0 }
   0x4   :  { %14 = vsyncpa [#allocation5], 0 }
   0x5   :  { %16 = vsyncpa [#allocation5 + $0x1], 0  ;;  %s2134_s18 = smov 0   ;;  %s2136_s19 = smov 0  }
   0x6   :  { %s2138_s20 = smov 0   ;;  %s2140_s21 = smov 0  }
   0x7   :  { %s2142_s22 = smov 0   ;;  %s2144_s23 = smov 0  }
   0x8   :  { %s2146_s24 = smov 0   ;;  %s2148_s25 = smov 0  }
   0x9 LB: > { %3893 = sst [smem:[#allocation8_spill]] %s2089_s23  ;;  %s1604_s26 = sadd.s32 4294967295, %s2097_s25   ;;  %s2097_s25 = sphi %s2148_s25, %s22_s25   ;;  %s2093_s24 = sphi %s2146_s24, %s4207_s24   ;;  %s2089_s23 = sphi %s2144_s23, %s4206_s23   ;;  %s2085_s22 = sphi %s2142_s22, %s4205_s22   ;;  %s2081_s21 = sphi %s2140_s21, %s4204_s21   ;;  %s2077_s20 = sphi %s2138_s20, %s4210_s20   ;;  %s2073_s19 = sphi %s2136_s19, %s4209_s19   ;;  %s2069_s18 = sphi %s2134_s18, %s4208_s18  }
   0xa   : > { %3894 = sst [smem:[#allocation9_spill]] %s2093_s24  ;;  %s1605_s27 = sadd.s32 4294967294, %s2097_s25  }
   0xb   : > { %s31_s28 = sadd.s32 1, %s2089_s23  ;;  %s34_s29 = sadd.s32 1, %s2093_s24 }
   0xc   : > { %p32_p0 = scmp.ge.s32.totalorder %s31_s28, 3  ;;  %p155_p1 = scmp.ne.s32.totalorder %s2077_s20, %s2073_s19 }
   0xd   : > { %p156_p2 = scmp.eq.s32.totalorder %s1604_s26, 17  ;;  %p161_p4 = scmp.ne.s32.totalorder %s2073_s19, %s2069_s18 }
   0xe   : > { %s4212_s28 = smov (%p32_p0, %s31_s28), 0  ;;  %s4214_s29 = smov (!%p32_p0, %s34_s29), %s2093_s24 }
   0xf   : > { %3895 = sst [smem:[#allocation10_spill]] %s4212_s28  ;;  %p2183_p3 = por %p156_p2, %p155_p1 }
  0x10   : > { %p36_p5 = scmp.ge.s32.totalorder %s4214_s29, 6  ;;  %p162_p6 = scmp.eq.s32.totalorder %s1605_s27, 17 }
  0x11   : > { %p1608_p7 = scmp.ge.s32.totalorder %s2097_s25, 1  ;;  %p241_p8 = scmp.lt.s32.totalorder %s2097_s25, 19 }
  0x12   : > { %s4216_s29 = smov (%p36_p5, %s4214_s29), 0  ;;  %p2193_p9 = por %p162_p6, %p161_p4 }
  0x13   : > { %3897 = sst [smem:[#allocation11_spill]] %s4216_s29  ;;  %p242_p10 = pnand %p1608_p7, %p241_p8 }
  0x14   : > { %s142_s7 = ssub.s32 %s2093_s24, %s4216_s29  ;;  %s145_s8 = sadd.s32 1, %s2077_s20 }
  0x15   : > { %p143_p11 = scmp.eq.s32.totalorder %s142_s7, 0  ;;  %245 = sbr.rel (%p242_p10) target bundleno = 442 (0x1ba), region = 36 }
  0x16   : > { %s2204_s10 = sand.u32 (!%p242_p10), 1, %s2073_s19   ;;  %s1611_s11 = sshll.u32 (!%p242_p10), %s2085_s22, 4 }
  0x17   : > { %s2201_s9 = scalar_select %p143_p11, %s2077_s20, %s145_s8  }
  0x18   : > { %s1609_s12 = sshll.u32 (!%p242_p10), %s2204_s10, 7  ;;  %p289_p12 = scmp.lt.s32.totalorder (!%p242_p10), %s1611_s11, 95 }
  0x19   : > { %s1613_s13 = sshll.u32 (!%p242_p10), %s2081_s21, 5  ;;  %s1617_s14 = sshll.u32 (!%p242_p10), %s2081_s21, 1 }
  0x1a   : > { %s4218_s11 = smov (!%p289_p12, %s1611_s11), 95  ;;  %p295_p13 = scmp.lt.s32.totalorder %s1613_s13, 95 }
  0x1b   : > { %s1612_s15 = sshll.u32 %s4218_s11, 3  ;;  %s3899_s0 = sld [smem:[#allocation12_spill]] }
  0x1c   : > { %s2218_s8 = scalar_lea.vmem %s3881_s2, %s1612_s15  ;;  %s4220_s13 = smov (!%p295_p13, %s1613_s13), 95 }
  0x1d   : > { %p307_p0 = scmp.lt.s32.totalorder %s1617_s14, 5  ;;  %s1614_s29 = sshll.u32 %s4220_s13, 3 }
  0x1e   : > { %s2223_s23 = scalar_lea.vmem %s3880_s1, %s1614_s29  ;;  %s2233_s27 = scalar_lea.vmem [#allocation4], %s1609_s12 }
  0x1f   : > { %s4222_s14 = smov (!%p307_p0, %s1617_s14), 5  ;;  %p1618_p1 = scmp.ne.s32.totalorder %s2081_s21, 0 }
  0x20   : > { %s309_s17 = scalar_lea.vmem %s3882_s3, %s4222_s14 }
  0x21   : > { %s2213_s26 = scalar_lea.vmem %s3899_s0, %s1612_s15  ;;  %s2231_s0 = scalar_lea.vmem [#allocation2], %s1609_s12 }
  0x22   : > { %316 = sbr.rel (%p1618_p1) target bundleno = 72 (0x48), region = 40 }
  0x27   : > { %v2099_v0 = vmov 0.0  }
  0x28   : > { %317 = vst [vmem:[%s2231_s0] sm:$0xff] %v2099_v0 }
  0x29   : > { %318 = vst [vmem:[%s2231_s0 + $0x8] sm:$0xff] %v2099_v0 }
  0x2a   : > { %319 = vst [vmem:[%s2231_s0 + $0x10] sm:$0xff] %v2099_v0 }
  0x2b   : > { %320 = vst [vmem:[%s2231_s0 + $0x18] sm:$0xff] %v2099_v0 }
  0x2c   : > { %321 = vst [vmem:[%s2231_s0 + $0x20] sm:$0xff] %v2099_v0 }
  0x2d   : > { %322 = vst [vmem:[%s2231_s0 + $0x28] sm:$0xff] %v2099_v0 }
  0x2e   : > { %323 = vst [vmem:[%s2231_s0 + $0x30] sm:$0xff] %v2099_v0 }
  0x2f   : > { %324 = vst [vmem:[%s2231_s0 + $0x38] sm:$0xff] %v2099_v0 }
  0x30   : > { %325 = vst [vmem:[%s2231_s0 + $0x40] sm:$0xff] %v2099_v0 }
  0x31   : > { %326 = vst [vmem:[%s2231_s0 + $0x48] sm:$0xff] %v2099_v0 }
  0x32   : > { %327 = vst [vmem:[%s2231_s0 + $0x50] sm:$0xff] %v2099_v0 }
  0x33   : > { %328 = vst [vmem:[%s2231_s0 + $0x58] sm:$0xff] %v2099_v0 }
  0x34   : > { %329 = vst [vmem:[%s2231_s0 + $0x60] sm:$0xff] %v2099_v0 }
  0x35   : > { %330 = vst [vmem:[%s2231_s0 + $0x68] sm:$0xff] %v2099_v0 }
  0x36   : > { %331 = vst [vmem:[%s2231_s0 + $0x70] sm:$0xff] %v2099_v0 }
  0x37   : > { %332 = vst [vmem:[%s2231_s0 + $0x78] sm:$0xff] %v2099_v0 }
  0x38   : > { %333 = vst [vmem:[%s2233_s27] sm:$0xff] %v2099_v0 }
  0x39   : > { %334 = vst [vmem:[%s2233_s27 + $0x8] sm:$0xff] %v2099_v0 }
  0x3a   : > { %335 = vst [vmem:[%s2233_s27 + $0x10] sm:$0xff] %v2099_v0 }
  0x3b   : > { %336 = vst [vmem:[%s2233_s27 + $0x18] sm:$0xff] %v2099_v0 }
  0x3c   : > { %337 = vst [vmem:[%s2233_s27 + $0x20] sm:$0xff] %v2099_v0 }
  0x3d   : > { %338 = vst [vmem:[%s2233_s27 + $0x28] sm:$0xff] %v2099_v0 }
  0x3e   : > { %339 = vst [vmem:[%s2233_s27 + $0x30] sm:$0xff] %v2099_v0 }
  0x3f   : > { %340 = vst [vmem:[%s2233_s27 + $0x38] sm:$0xff] %v2099_v0 }
  0x40   : > { %341 = vst [vmem:[%s2233_s27 + $0x40] sm:$0xff] %v2099_v0 }
  0x41   : > { %342 = vst [vmem:[%s2233_s27 + $0x48] sm:$0xff] %v2099_v0 }
  0x42   : > { %343 = vst [vmem:[%s2233_s27 + $0x50] sm:$0xff] %v2099_v0 }
  0x43   : > { %344 = vst [vmem:[%s2233_s27 + $0x58] sm:$0xff] %v2099_v0 }
  0x44   : > { %345 = vst [vmem:[%s2233_s27 + $0x60] sm:$0xff] %v2099_v0 }
  0x45   : > { %346 = vst [vmem:[%s2233_s27 + $0x68] sm:$0xff] %v2099_v0 }
  0x46   : > { %347 = vst [vmem:[%s2233_s27 + $0x70] sm:$0xff] %v2099_v0 }
  0x47   : > { %348 = vst [vmem:[%s2233_s27 + $0x78] sm:$0xff] %v2099_v0 }
  0x48 PF: > { %v380_v1 = vld [vmem:[%s2223_s23 + $0x78] sm:$0xff]  ;;  %vm397_vm0 = vcmask 261120   ;;  %v379_v3 = vld [vmem:[%s2223_s23 + $0x70] sm:$0xff]  ;;  %v378_v5 = vld [vmem:[%s2223_s23 + $0x68] sm:$0xff]  ;;  %v2100_v22 = vmov 0   ;;  %s1684_s24 = sshll.u32 %s2081_s21, 8 }
  0x49   : > { %v396_v2 = vld [vmem:[%s2223_s23 + $0xf8] sm:$0xff]  ;;  %1619 = vmatpush.xpose.msk.msra.mxu0 %vm397_vm0, %v380_v1  ;;  %1727 = vmatpush.xpose.msk.msra.mxu2 %vm397_vm0, %v380_v1  ;;  %v395_v4 = vld [vmem:[%s2223_s23 + $0xf0] sm:$0xff]  ;;  %v394_v6 = vld [vmem:[%s2223_s23 + $0xe8] sm:$0xff]  ;;  %vm3889_vm13 = vmmov 1   ;;  %s1462_s11 = sshll.u32 %s2233_s27, 4  ;;  %s1428_s16 = scalar_lea.sflag [#allocation3], %s2204_s10  ;;  %s3817_s11 = int_to_ptr.vmem [resolvable:$true] %s1462_s11 }
  0x4a   : > { %1651 = vmatpush.xpose.msk.msra.mxu1 %vm397_vm0, %v396_v2  ;;  %1743 = vmatpush.xpose.msk.msra.mxu3 %vm397_vm0, %v396_v2  ;;  %v377_v7 = vld [vmem:[%s2223_s23 + $0x60] sm:$0xff]  ;;  %v376_v9 = vld [vmem:[%s2223_s23 + $0x58] sm:$0xff]  ;;  %v375_v11 = vld [vmem:[%s2223_s23 + $0x50] sm:$0xff]  ;;  %v772_v2 = vlaneseq  ;;  %s1991_s29 = scalar_lea.hbm %s3883_s4, 768 }
  0x4b   : > { %v393_v8 = vld [vmem:[%s2223_s23 + $0xe0] sm:$0xff]  ;;  %v392_v10 = vld [vmem:[%s2223_s23 + $0xd8] sm:$0xff]  ;;  %v391_v12 = vld [vmem:[%s2223_s23 + $0xd0] sm:$0xff]  ;;  %1840 = vset.pattern.permute.xlu0 %v2100_v22  ;;  %1841 = vset.pattern.permute.xlu1 %v2100_v22 }
  0x4c   : > { %v374_v13 = vld [vmem:[%s2223_s23 + $0x48] sm:$0xff]  ;;  %v373_v15 = vld [vmem:[%s2223_s23 + $0x40] sm:$0xff]  ;;  %v372_v17 = vld [vmem:[%s2223_s23 + $0x38] sm:$0xff]  ;;  %1842 = vset.pattern.permute.xlu2 %v2100_v22 }
  0x4d   : > { %1620 = vmatpush.xpose.msk.msra.mxu0 %vm397_vm0, %v379_v3  ;;  %1728 = vmatpush.xpose.msk.msra.mxu2 %vm397_vm0, %v379_v3  ;;  %v390_v14 = vld [vmem:[%s2223_s23 + $0xc8] sm:$0xff]  ;;  %v389_v16 = vld [vmem:[%s2223_s23 + $0xc0] sm:$0xff]  ;;  %v388_v18 = vld [vmem:[%s2223_s23 + $0xb8] sm:$0xff] }
  0x4e   : > { %1652 = vmatpush.xpose.msk.msra.mxu1 %vm397_vm0, %v395_v4  ;;  %1744 = vmatpush.xpose.msk.msra.mxu3 %vm397_vm0, %v395_v4  ;;  %v672_v19 = vld [vmem:[%s2218_s8] sm:$0xff]  ;;  %v371_v20 = vld [vmem:[%s2223_s23 + $0x30] sm:$0xff]  ;;  %v370_v23 = vld [vmem:[%s2223_s23 + $0x28] sm:$0xff]  ;;  %v808_v4 = vand.u32 127, %v772_v2 }
  0x4f   : > { %v387_v21 = vld [vmem:[%s2223_s23 + $0xb0] sm:$0xff]  ;;  %690 = vperm.xlu0 %1840, %v672_v19   ;;  %v386_v24 = vld [vmem:[%s2223_s23 + $0xa8] sm:$0xff]  ;;  %v369_v26 = vld [vmem:[%s2223_s23 + $0x20] sm:$0xff] }
  0x50   : > { %v673_v25 = vld [vmem:[%s2218_s8 + $0x8] sm:$0xff]  ;;  %v385_v27 = vld [vmem:[%s2223_s23 + $0xa0] sm:$0xff]  ;;  %v368_v28 = vld [vmem:[%s2223_s23 + $0x18] sm:$0xff] }
  0x51   : > { %1621 = vmatpush.xpose.msk.msra.mxu0 %vm397_vm0, %v378_v5  ;;  %1729 = vmatpush.xpose.msk.msra.mxu2 %vm397_vm0, %v378_v5  ;;  %v384_v29 = vld [vmem:[%s2223_s23 + $0x98] sm:$0xff]  ;;  %v674_v30 = vld [vmem:[%s2218_s8 + $0x10] sm:$0xff]  ;;  %v366_v34 = vld [vmem:[%s2223_s23 + $0x8] sm:$0xff] }
  0x52   : > { %1653 = vmatpush.xpose.msk.msra.mxu1 %vm397_vm0, %v394_v6  ;;  %1745 = vmatpush.xpose.msk.msra.mxu3 %vm397_vm0, %v394_v6  ;;  %v678_v31 = vld [vmem:[%s2218_s8 + $0x30] sm:$0xff]  ;;  %v382_v35 = vld [vmem:[%s2223_s23 + $0x88] sm:$0xff]  ;;  %v675_v36 = vld [vmem:[%s2218_s8 + $0x18] sm:$0xff] }
  0x53   : > { %v367_v32 = vld [vmem:[%s2223_s23 + $0x10] sm:$0xff]  ;;  %696 = vperm.xlu1 %1841, %v674_v30   ;;  %v681_v37 = vld [vmem:[%s2218_s8 + $0x48] sm:$0xff]  ;;  %v365_v38 = vld [vmem:[%s2223_s23] sm:$0xff] }
  0x54   : > { %v383_v33 = vld [vmem:[%s2223_s23 + $0x90] sm:$0xff]  ;;  %v381_v39 = vld [vmem:[%s2223_s23 + $0x80] sm:$0xff]  ;;  %v679_v43 = vld [vmem:[%s2218_s8 + $0x38] sm:$0xff]  ;;  %s2431_s23 = sshll.u32 %s2085_s22, 7 }
  0x55   : > { %1622 = vmatpush.xpose.msk.msra.mxu0 %vm397_vm0, %v377_v7  ;;  %1730 = vmatpush.xpose.msk.msra.mxu2 %vm397_vm0, %v377_v7  ;;  %v349_v40 = vld [vmem:[%s2213_s26] sm:$0xff]  ;;  %v350_v45 = vld [vmem:[%s2213_s26 + $0x8] sm:$0xff]  ;;  %v682_v48 = vld [vmem:[%s2218_s8 + $0x50] sm:$0xff]  ;;  %v2440_v7 = vstv %s2431_s23  ;;  %s1444_s12 = scalar_lea.hbm %s3883_s4, %s2431_s23  ;;  %s1461_s15 = scalar_lea.hbm %s3884_s5, %s2431_s23 }
  0x56   : > { %1654 = vmatpush.xpose.msk.msra.mxu1 %vm397_vm0, %v393_v8  ;;  %1746 = vmatpush.xpose.msk.msra.mxu3 %vm397_vm0, %v393_v8  ;;  %v357_v41 = vld [vmem:[%s2213_s26 + $0x40] sm:$0xff]  ;;  %v358_v46 = vld [vmem:[%s2213_s26 + $0x48] sm:$0xff]  ;;  %v687_v49 = vld [vmem:[%s2218_s8 + $0x78] sm:$0xff]  ;;  %v810_v8 = vstv %s1684_s24  ;;  %s3796_s7 = sshll.u32 %s1461_s15, 4  ;;  %s1465_s7 = int_to_ptr.hbm [resolvable:$true] %s3796_s7 }
  0x57   : > { %693 = vperm.xlu0 %1840, %v673_v25   ;;  %v676_v42 = vld [vmem:[%s2218_s8 + $0x20] sm:$0xff]  ;;  %v677_v47 = vld [vmem:[%s2218_s8 + $0x28] sm:$0xff]  ;;  %v351_v50 = vld [vmem:[%s2213_s26 + $0x10] sm:$0xff] }
  0x58   : > { %v684_v44 = vld [vmem:[%s2218_s8 + $0x60] sm:$0xff]  ;;  %702 = vperm.xlu2 %1842, %v676_v42   ;;  %v359_v51 = vld [vmem:[%s2213_s26 + $0x50] sm:$0xff]  ;;  %v685_v53 = vld [vmem:[%s2218_s8 + $0x68] sm:$0xff] }
  0x59   : > { %1623 = vmatpush.xpose.msk.msra.mxu0 %vm397_vm0, %v376_v9  ;;  %1731 = vmatpush.xpose.msk.msra.mxu2 %vm397_vm0, %v376_v9  ;;  %v680_v52 = vld [vmem:[%s2218_s8 + $0x40] sm:$0xff]  ;;  %v352_v54 = vld [vmem:[%s2213_s26 + $0x18] sm:$0xff]  ;;  %v686_v59 = vld [vmem:[%s2218_s8 + $0x70] sm:$0xff]  ;;  %v2442_v9 = vshrl.u32 %v772_v2, 7 }
  0x5a   : > { %1655 = vmatpush.xpose.msk.msra.mxu1 %vm397_vm0, %v392_v10  ;;  %1747 = vmatpush.xpose.msk.msra.mxu3 %vm397_vm0, %v392_v10  ;;  %v360_v55 = vld [vmem:[%s2213_s26 + $0x58] sm:$0xff]  ;;  %v353_v57 = vld [vmem:[%s2213_s26 + $0x20] sm:$0xff]  ;;  %v354_v60 = vld [vmem:[%s2213_s26 + $0x28] sm:$0xff]  ;;  %v809_v10 = vadd.s32 128, %v808_v4 }
  0x5b   : > { %699 = vperm.xlu1 %1841, %v675_v36   ;;  %v683_v56 = vld [vmem:[%s2218_s8 + $0x58] sm:$0xff]  ;;  %v361_v58 = vld [vmem:[%s2213_s26 + $0x60] sm:$0xff]  ;;  %v362_v61 = vld [vmem:[%s2213_s26 + $0x68] sm:$0xff]  ;;  %v2470_v22 = vadd.s32 32, %v2442_v9  ;;  %s1445_s8 = sshll.u32 %s2231_s0, 4  ;;  %s1446_s8 = int_to_ptr.vmem [resolvable:$true] %s1445_s8 }
  0x5c   : > { %v355_v62 = vld [vmem:[%s2213_s26 + $0x30] sm:$0xff]  ;;  %v356_v0 = vld [vmem:[%s2213_s26 + $0x38] sm:$0xff]  ;;  %v688_v6 = vld [vmem:[%s309_s17] sm:$0x3] }
  0x5d   : > { %1624 = vmatpush.xpose.msk.msra.mxu0 %vm397_vm0, %v375_v11  ;;  %1732 = vmatpush.xpose.msk.msra.mxu2 %vm397_vm0, %v375_v11  ;;  %v363_v63 = vld [vmem:[%s2213_s26 + $0x70] sm:$0xff]  ;;  %v364_v1 = vld [vmem:[%s2213_s26 + $0x78] sm:$0xff]  ;;  %v2444_v11 = vperm.slane %v688_v6, 0  ;;  %s3786_s26 = sshll.u32 %s1444_s12, 4  ;;  %s1448_s26 = int_to_ptr.hbm [resolvable:$true] %s3786_s26 }
  0x5e   : > { %1656 = vmatpush.xpose.msk.msra.mxu1 %vm397_vm0, %v391_v12  ;;  %1748 = vmatpush.xpose.msk.msra.mxu3 %vm397_vm0, %v391_v12  ;;  %v790_v12 = vadd.s32 %v2440_v7, %v2442_v9  ;;  %s1985_s17 = sshra.s32 %s1448_s26, 4  ;;  %s1986_s17 = int_to_ptr.hbm [resolvable:$true] %s1985_s17 }
  0x5f   : > { %708 = vperm.xlu0 %1840, %v678_v31   ;;  %s1987_s23 = scalar_lea.hbm %s1986_s17, 128  ;;  %p1992_p6 = scmp.lt.s32.totalorder %s1986_s17, %s3883_s4 }
  0x60   : > { %705 = vperm.xlu2 %1842, %v677_v47   ;;  %p1988_p2 = scmp.ne.s32.totalorder %s1986_s17, %s1987_s23  ;;  %p1993_p7 = scmp.lt.s32.totalorder %s1991_s29, %s1987_s23 }
  0x61   : > { %1625 = vmatpush.xpose.msk.msra.mxu0 %vm397_vm0, %v374_v13  ;;  %1733 = vmatpush.xpose.msk.msra.mxu2 %vm397_vm0, %v374_v13  ;;  %v2448_v13 = vadd.s32 %v810_v8, %v808_v4 }
  0x62   : > { %1657 = vmatpush.xpose.msk.msra.mxu1 %vm397_vm0, %v390_v14  ;;  %1749 = vmatpush.xpose.msk.msra.mxu3 %vm397_vm0, %v390_v14  ;;  %p1989_p4 = pnand %p1988_p2, %p2183_p3  ;;  %p1994_p8 = por %p1993_p7, %p1992_p6 }
  0x63   : > { %711 = vperm.xlu1 %1841, %v679_v43   ;;  %vm813_vm1 = vcmp.ne.s32.totalorder %v790_v12, %v2448_v13  ;;  %vm3891_vm5 = vcmp.lt.s32.totalorder %v2448_v13, 600 }
  0x64   : > { %p1990_p5 = pneg %p1989_p4 }
  0x65   : > { %1626 = vmatpush.xpose.msk.msra.mxu0 %vm397_vm0, %v373_v15  ;;  %1734 = vmatpush.xpose.msk.msra.mxu2 %vm397_vm0, %v373_v15  ;;  %v774_v15 = vadd.s32 8, %v2442_v9 }
  0x66   : > { %1658 = vmatpush.xpose.msk.msra.mxu1 %vm397_vm0, %v389_v16  ;;  %1750 = vmatpush.xpose.msk.msra.mxu3 %vm397_vm0, %v389_v16  ;;  %v2453_v16 = vperm.slane %v688_v6, 1  ;;  %p1995_p10 = pnand %p1994_p8, %p1990_p5 }
  0x67   : > { %717 = vperm.xlu0 %1840, %v681_v37   ;;  %v791_v19 = vadd.s32 %v2440_v7, %v774_v15 }
  0x68   : > { %714 = vperm.xlu2 %1842, %v680_v52  }
  0x69   : > { %1627 = vmatpush.xpose.msk.msra.mxu0 %vm397_vm0, %v372_v17  ;;  %1735 = vmatpush.xpose.msk.msra.mxu2 %vm397_vm0, %v372_v17  ;;  %v2455_v17 = vadd.s32 %v810_v8, %v809_v10  ;;  %vm815_vm9 = vcmp.ne.s32.totalorder %v791_v19, %v2448_v13 }
  0x6a   : > { %1659 = vmatpush.xpose.msk.msra.mxu1 %vm397_vm0, %v388_v18  ;;  %1751 = vmatpush.xpose.msk.msra.mxu3 %vm397_vm0, %v388_v18  ;;  %v781_v18 = vadd.s32 64, %v2442_v9 }
  0x6b   : > { %720 = vperm.xlu1 %1841, %v682_v48   ;;  %vm814_vm3 = vcmp.ne.s32.totalorder %v790_v12, %v2455_v17  ;;  %vm3888_vm6 = vcmp.lt.s32.totalorder %v2455_v17, 600  ;;  %vm816_vm10 = vcmp.ne.s32.totalorder %v791_v19, %v2455_v17 }
  0x6d   : > { %1628 = vmatpush.xpose.msk.msra.mxu0 %vm397_vm0, %v371_v20  ;;  %1736 = vmatpush.xpose.msk.msra.mxu2 %vm397_vm0, %v371_v20 }
  0x6e   : > { %1660 = vmatpush.xpose.msk.msra.mxu1 %vm397_vm0, %v387_v21  ;;  %1752 = vmatpush.xpose.msk.msra.mxu3 %vm397_vm0, %v387_v21 }
  0x6f   : > { %726 = vperm.xlu0 %1840, %v684_v44  }
  0x70   : > { %723 = vperm.xlu2 %1842, %v683_v56  }
  0x71   : > { %1629 = vmatpush.xpose.msk.msra.mxu0 %vm397_vm0, %v370_v23  ;;  %1737 = vmatpush.xpose.msk.msra.mxu2 %vm397_vm0, %v370_v23 }
  0x72   : > { %1661 = vmatpush.xpose.msk.msra.mxu1 %vm397_vm0, %v386_v24  ;;  %1753 = vmatpush.xpose.msk.msra.mxu3 %vm397_vm0, %v386_v24 }
  0x73   : > { %729 = vperm.xlu1 %1841, %v685_v53  }
  0x75   : > { %1630 = vmatpush.xpose.msk.msra.mxu0 %vm397_vm0, %v369_v26  ;;  %1738 = vmatpush.xpose.msk.msra.mxu2 %vm397_vm0, %v369_v26  ;;  %v2473_v26 = vadd.s32 %v2440_v7, %v781_v18 }
  0x76   : > { %1662 = vmatpush.xpose.msk.msra.mxu1 %vm397_vm0, %v385_v27  ;;  %1754 = vmatpush.xpose.msk.msra.mxu3 %vm397_vm0, %v385_v27  ;;  %v1339_v27 = vld [vmem:[%s2231_s0 + $0x40] sm:$0xff] }
  0x77   : > { %735 = vperm.xlu0 %1840, %v687_v49  }
  0x78   : > { %732 = vperm.xlu2 %1842, %v686_v59  }
  0x79   : > { %1631 = vmatpush.xpose.msk.msra.mxu0 %vm397_vm0, %v368_v28  ;;  %1739 = vmatpush.xpose.msk.msra.mxu2 %vm397_vm0, %v368_v28 }
  0x7a   : > { %1663 = vmatpush.xpose.msk.msra.mxu1 %vm397_vm0, %v384_v29  ;;  %1755 = vmatpush.xpose.msk.msra.mxu3 %vm397_vm0, %v384_v29 }
  0x7d   : > { %1632 = vmatpush.xpose.msk.msra.mxu0 %vm397_vm0, %v367_v32  ;;  %1740 = vmatpush.xpose.msk.msra.mxu2 %vm397_vm0, %v367_v32 }
  0x7e   : > { %1664 = vmatpush.xpose.msk.msra.mxu1 %vm397_vm0, %v383_v33  ;;  %1756 = vmatpush.xpose.msk.msra.mxu3 %vm397_vm0, %v383_v33  ;;  %v775_v33 = vadd.s32 16, %v2442_v9 }
  0x81   : > { %1633 = vmatpush.xpose.msk.msra.mxu0 %vm397_vm0, %v366_v34  ;;  %1741 = vmatpush.xpose.msk.msra.mxu2 %vm397_vm0, %v366_v34 }
  0x82   : > { %1665 = vmatpush.xpose.msk.msra.mxu1 %vm397_vm0, %v382_v35  ;;  %1757 = vmatpush.xpose.msk.msra.mxu3 %vm397_vm0, %v382_v35 }
  0x85   : > { %1634 = vmatpush.xpose.msk.msra.mxu0 %vm397_vm0, %v365_v38  ;;  %1742 = vmatpush.xpose.msk.msra.mxu2 %vm397_vm0, %v365_v38  ;;  %v782_v38 = vadd.s32 72, %v2442_v9 }
  0x86   : > { %1666 = vmatpush.xpose.msk.msra.mxu1 %vm397_vm0, %v381_v39  ;;  %1758 = vmatpush.xpose.msk.msra.mxu3 %vm397_vm0, %v381_v39 }
  0x87   : > { %v2549_v56 = vadd.s32 %v2440_v7, %v782_v38  ;;  %v1380_v38 = vld [vmem:[%s2233_s27 + $0x8] sm:$0xff] }
  0x88   : > { %1635 = vmatmul.msk.f32.vlgmr.msra.gmra.mxu0 %vm397_vm0, %v349_v40  ;;  %1643 = vmatmul.msk.f32.vlgmr.msra.gmra.mxu2 %vm397_vm0, %v357_v41 }
  0x89   : > { %1667 = vmatmul.msk.f32.vlgmr.msra.gmra.mxu1 %vm397_vm0, %v349_v40  ;;  %1675 = vmatmul.msk.f32.vlgmr.msra.gmra.mxu3 %vm397_vm0, %v357_v41 }
  0x90   : > { %1636 = vmatmul.msk.f32.gmra.mxu0 %vm397_vm0, %v350_v45  ;;  %1644 = vmatmul.msk.f32.gmra.mxu2 %vm397_vm0, %v358_v46 }
  0x91   : > { %1668 = vmatmul.msk.f32.gmra.mxu1 %vm397_vm0, %v350_v45  ;;  %1676 = vmatmul.msk.f32.gmra.mxu3 %vm397_vm0, %v358_v46 }
  0x98   : > { %1637 = vmatmul.msk.f32.gmra.mxu0 %vm397_vm0, %v351_v50  ;;  %1645 = vmatmul.msk.f32.gmra.mxu2 %vm397_vm0, %v359_v51 }
  0x99   : > { %1669 = vmatmul.msk.f32.gmra.mxu1 %vm397_vm0, %v351_v50  ;;  %1677 = vmatmul.msk.f32.gmra.mxu3 %vm397_vm0, %v359_v51  ;;  %v2536_v50 = vadd.s32 %v2440_v7, %v775_v33 }
  0xa0   : > { %1638 = vmatmul.msk.f32.gmra.mxu0 %vm397_vm0, %v352_v54  ;;  %1646 = vmatmul.msk.f32.gmra.mxu2 %vm397_vm0, %v360_v55 }
  0xa1   : > { %1670 = vmatmul.msk.f32.gmra.mxu1 %vm397_vm0, %v352_v54  ;;  %1678 = vmatmul.msk.f32.gmra.mxu3 %vm397_vm0, %v360_v55 }
  0xa8   : > { %1639 = vmatmul.msk.f32.gmra.mxu0 %vm397_vm0, %v353_v57  ;;  %1647 = vmatmul.msk.f32.gmra.mxu2 %vm397_vm0, %v361_v58 }
  0xa9   : > { %1671 = vmatmul.msk.f32.gmra.mxu1 %vm397_vm0, %v353_v57  ;;  %1679 = vmatmul.msk.f32.gmra.mxu3 %vm397_vm0, %v361_v58 }
  0xb0   : > { %1640 = vmatmul.msk.f32.gmra.mxu0 %vm397_vm0, %v354_v60  ;;  %1648 = vmatmul.msk.f32.gmra.mxu2 %vm397_vm0, %v362_v61 }
  0xb1   : > { %1672 = vmatmul.msk.f32.gmra.mxu1 %vm397_vm0, %v354_v60  ;;  %1680 = vmatmul.msk.f32.gmra.mxu3 %vm397_vm0, %v362_v61 }
  0xb2   : > { %v2428_v3 = vpop.permute.xlu2 %702 }
  0xb8   : > { %1641 = vmatmul.msk.f32.gmra.mxu0 %vm397_vm0, %v355_v62  ;;  %1649 = vmatmul.msk.f32.gmra.mxu2 %vm397_vm0, %v363_v63 }
  0xb9   : > { %1673 = vmatmul.msk.f32.gmra.mxu1 %vm397_vm0, %v355_v62  ;;  %1681 = vmatmul.msk.f32.gmra.mxu3 %vm397_vm0, %v363_v63 }
  0xba   : > { %v2450_v14 = vpop.permute.xlu2 %705 }
  0xc0   : > { %1642 = vmatmul.msk.f32.gmra.mxu0 %vm397_vm0, %v356_v0  ;;  %1650 = vmatmul.msk.f32.gmra.mxu2 %vm397_vm0, %v364_v1 }
  0xc1   : > { %1674 = vmatmul.msk.f32.gmra.mxu1 %vm397_vm0, %v356_v0  ;;  %1682 = vmatmul.msk.f32.gmra.mxu3 %vm397_vm0, %v364_v1  ;;  %v691_v5 = vpop.permute.xlu0 %690 }
  0xc2   : > { %vm739_vm2 = vcmp.eq.s32.totalorder %v691_v5, %v2444_v11  ;;  %vm740_vm4 = vcmp.eq.s32.totalorder %v691_v5, %v2453_v16  ;;  %v2492_v34 = vpop.permute.xlu2 %714 }
  0xc3   : > { %vm847_vm7 = vmand %vm739_vm2, %vm813_vm1  ;;  %vm829_vm1 = vcmp.ne.s32.totalorder %v2473_v26, %v2448_v13 }
  0xc4   : > { %vm2477_vm8 = vmand %vm740_vm4, %vm814_vm3 }
  0xc5   : > { %vm2485_vm11 = vmand %vm847_vm7, %vm3891_vm5  ;;  %v2577_v6 = vpop.permute.xlu1 %696 }
  0xc6   : > { %vm2497_vm14 = vmxor %vm739_vm2, %vm3889_vm13 }
  0xc7   : > { %vm2507_vm0 = vmxor %vm740_vm4, %vm3889_vm13  ;;  %vm755_vm4 = vcmp.eq.s32.totalorder %v2492_v34, %v2444_v11 }
  0xc8   : > { %vm2519_vm3 = vmand %vm2477_vm8, %vm3888_vm6 }
  0xc9   : > { %v2461_v20 = vpop.permute.xlu0 %693  ;;  %vm2531_vm2 = vmand %vm2497_vm14, %vm3891_vm5 }
  0xca   : > { %vm741_vm12 = vcmp.eq.s32.totalorder %v2461_v20, %v2444_v11  ;;  %vm742_vm15 = vcmp.eq.s32.totalorder %v2461_v20, %v2453_v16  ;;  %vm2542_vm8 = vmand %vm2507_vm0, %vm3888_vm6 }
  0xcb   : > { %vm2556_vm14 = vmand %vm741_vm12, %vm815_vm9 }
  0xcc   : > { %vm2565_vm0 = vmand %vm742_vm15, %vm816_vm10 }
  0xcd   : > { %vm2573_vm9 = vmxor %vm741_vm12, %vm3889_vm13 }
  0xce   : > { %vm2583_vm10 = vmxor %vm742_vm15, %vm3889_vm13 }
  0xcf   : > { %vm2595_vm6 = vmand %vm2556_vm14, %vm3891_vm5 }
  0xd0   : > { %vm2609_vm7 = vmand %vm755_vm4, %vm829_vm1  ;;  %vm3928_vm1 = vcmp.lt.s32.totalorder %v2455_v17, 600 }
  0xd1   : > { %v2546_v54 = vpop.permute.xlu0 %708  ;;  %vm2620_vm14 = vmand %vm2573_vm9, %vm3891_vm5  ;;  %vm3932_vm9 = vcmp.eq.s32.totalorder %v2492_v34, %v2453_v16 }
  0xd2   : > { %vm2630_vm12 = vmand %vm2565_vm0, %vm3928_vm1 }
 0x105   : > { %v559_v21 = vpop.f32.mrf.mxu0 }
 0x106   : > { %v979_v23 = vadd.f32 1.0, %v559_v21  ;;  %v1685_v24 = vadd.f32 -1.0, %v559_v21  ;;  %v624_v25 = vpop.f32.mrf.mxu1 }
 0x107   : > { %v980_v28 = vadd.f32 1.0, %v624_v25  ;;  %v1686_v29 = vadd.f32 -1.0, %v624_v25 }
 0x108   : > { %v1011_v31 = vmul.f32 -32.0, %v979_v23  ;;  %v1171_v32 = vmul.f32 32.0, %v1685_v24 }
 0x109   : > { %v1012_v36 = vmul.f32 -32.0, %v980_v28  ;;  %v1172_v37 = vmul.f32 32.0, %v1686_v29  ;;  %v2614_v28 = vadd.s32 24, %v2442_v9 }
 0x10a   : > { %v1043_v40 = vmul.f32 1.442695, %v1011_v31  ;;  %v1203_v41 = vmul.f32 1.442695, %v1171_v32 }
 0x10b   : > { %v1045_v43 = vmul.f32 1.442695, %v1012_v36  ;;  %v1205_v44 = vmul.f32 1.442695, %v1172_v37  ;;  %v583_v45 = vpop.f32.mrf.mxu2 }
 0x10c   : > { %1843 = vpow2.f32 %v1043_v40  ;;  %v995_v47 = vadd.f32 1.0, %v583_v45  ;;  %v1701_v48 = vadd.f32 -1.0, %v583_v45  ;;  %v648_v49 = vpop.f32.mrf.mxu3  ;;  %v1331_v45 = vld [vmem:[%s2231_s0] sm:$0xff] }
 0x10d   : > { %1845 = vpow2.f32 %v1203_v41  ;;  %v996_v52 = vadd.f32 1.0, %v648_v49  ;;  %v1702_v53 = vadd.f32 -1.0, %v648_v49  ;;  %v562_v55 = vpop.f32.mrf.mxu0 }
 0x10e   : > { %1847 = vpow2.f32 %v1045_v43  ;;  %v1027_v58 = vmul.f32 -32.0, %v995_v47  ;;  %v1187_v59 = vmul.f32 32.0, %v1701_v48  ;;  %v981_v60 = vadd.f32 1.0, %v562_v55  ;;  %v627_v1 = vpop.f32.mrf.mxu1 }
 0x10f   : > { %1849 = vpow2.f32 %v1205_v44  ;;  %v1028_v62 = vmul.f32 -32.0, %v996_v52  ;;  %v1188_v63 = vmul.f32 32.0, %v1702_v53  ;;  %v1687_v0 = vadd.f32 -1.0, %v562_v55  ;;  %v1379_v52 = vld [vmem:[%s2233_s27] sm:$0xff]  ;;  %v1332_v53 = vld [vmem:[%s2231_s0 + $0x8] sm:$0xff] }
 0x110   : > { %v1075_v4 = vmul.f32 1.442695, %v1027_v58  ;;  %v1235_v5 = vmul.f32 1.442695, %v1187_v59  ;;  %v1013_v8 = vmul.f32 -32.0, %v981_v60  ;;  %v982_v10 = vadd.f32 1.0, %v627_v1  ;;  %v2670_v59 = vpop.permute.xlu0 %717 }
 0x111   : > { %v1077_v15 = vmul.f32 1.442695, %v1028_v62  ;;  %v1237_v18 = vmul.f32 1.442695, %v1188_v63  ;;  %v1173_v19 = vmul.f32 32.0, %v1687_v0  ;;  %v1688_v21 = vadd.f32 -1.0, %v627_v1 }
 0x112   : > { %v1844_v23 = vpop.eup %1843  ;;  %1851 = vpow2.f32 %v1075_v4  ;;  %v1047_v24 = vmul.f32 1.442695, %v1013_v8  ;;  %v1014_v25 = vmul.f32 -32.0, %v982_v10 }
 0x113   : > { %v1846_v29 = vpop.eup %1845  ;;  %v1107_v32 = vsel %vm2485_vm11, %v1844_v23, 0.0  ;;  %1853 = vpow2.f32 %v1235_v5  ;;  %v1207_v33 = vmul.f32 1.442695, %v1173_v19  ;;  %v1174_v35 = vmul.f32 32.0, %v1688_v21  ;;  %v586_v36 = vpop.f32.mrf.mxu2 }
 0x114   : > { %v1848_v37 = vpop.eup %1847  ;;  %v1267_v39 = vsel %vm2531_vm2, %v1846_v29, 0.0  ;;  %1855 = vpow2.f32 %v1077_v15  ;;  %v1049_v30 = vmul.f32 1.442695, %v1014_v25  ;;  %v997_v40 = vadd.f32 1.0, %v586_v36  ;;  %v651_v41 = vpop.f32.mrf.mxu3  ;;  %vm2649_vm2 = vmand %vm2609_vm7, %vm3891_vm5 }
 0x115   : > { %vm3931_vm11 = vcmp.ne.s32.totalorder %v2473_v26, %v2455_v17  ;;  %v1850_v43 = vpop.eup %1849  ;;  %v1108_v44 = vsel %vm2519_vm3, %v1848_v37, 0.0  ;;  %1857 = vpow2.f32 %v1237_v18  ;;  %v1209_v46 = vmul.f32 1.442695, %v1174_v35  ;;  %vm3935_vm3 = vmmov %vm3928_vm1  ;;  %v565_v21 = vpop.f32.mrf.mxu0 }
 0x116   : > { %vm864_vm15 = vmand %vm3932_vm9, %vm3931_vm11  ;;  %v1703_v47 = vadd.f32 -1.0, %v586_v36  ;;  %v1268_v26 = vsel %vm2542_vm8, %v1850_v43, 0.0  ;;  %v1299_v49 = vadd.f32 %v1108_v44, %v1107_v32  ;;  %1859 = vpow2.f32 %v1047_v24  ;;  %v1387_v36 = vld [vmem:[%s2233_s27 + $0x40] sm:$0xff] }
 0x117   : > { %v1029_v42 = vmul.f32 -32.0, %v997_v40  ;;  %vm2658_vm0 = vmand %vm864_vm15, %vm3935_vm3  ;;  %v1315_v55 = vadd.f32 %v1268_v26, %v1267_v39  ;;  %1861 = vpow2.f32 %v1207_v33  ;;  %v998_v58 = vadd.f32 1.0, %v651_v41  ;;  %v630_v26 = vpop.f32.mrf.mxu1 }
 0x118   : > { %v1189_v57 = vmul.f32 32.0, %v1703_v47  ;;  %vm2666_vm7 = vmxor %vm755_vm4, %vm3889_vm13  ;;  %v1852_v60 = vpop.eup %1851  ;;  %v1347_v61 = vadd.f32 %v1331_v45, %v1299_v49  ;;  %1863 = vpow2.f32 %v1049_v30  ;;  %v1704_v63 = vadd.f32 -1.0, %v651_v41 }
 0x119   : > { %v1079_v62 = vmul.f32 1.442695, %v1029_v42  ;;  %vm3940_vm8 = vmmov %vm3932_vm9  ;;  %vm831_vm4 = vcmp.ne.s32.totalorder %v2549_v56, %v2448_v13  ;;  %vm757_vm1 = vcmp.eq.s32.totalorder %v2670_v59, %v2444_v11  ;;  %v1854_v1 = vpop.eup %1853  ;;  %v1395_v2 = vadd.f32 %v1379_v52, %v1315_v55 }
 0x11a   : > { %vm2676_vm15 = vmxor %vm3940_vm8, %vm3889_vm13  ;;  %1865 = vpow2.f32 %v1209_v46  ;;  %v1239_v4 = vmul.f32 1.442695, %v1189_v57  ;;  %v1030_v5 = vmul.f32 -32.0, %v998_v58  ;;  %v1856_v8 = vpop.eup %1855  ;;  %1363 = vst [vmem:[%s2231_s0] sm:$0xff] %v1347_v61  ;;  %v1190_v10 = vmul.f32 32.0, %v1704_v63 }
 0x11b   : > { %vm2688_vm11 = vmand %vm2666_vm7, %vm3891_vm5  ;;  %1867 = vpow2.f32 %v1079_v62  ;;  %v1123_v18 = vsel %vm2649_vm2, %v1852_v60, 0.0  ;;  %v1858_v23 = vpop.eup %1857  ;;  %1411 = vst [vmem:[%s2233_s27] sm:$0xff] %v1395_v2  ;;  %v1124_v29 = vsel %vm2658_vm0, %v1856_v8, 0.0  ;;  %v983_v32 = vadd.f32 1.0, %v565_v21  ;;  %v589_v49 = vpop.f32.mrf.mxu2 }
 0x11c   : > { %vm3945_vm8 = vmmov %vm3935_vm3  ;;  %v1283_v19 = vsel %vm2688_vm11, %v1854_v1, 0.0  ;;  %1869 = vpow2.f32 %v1239_v4  ;;  %v1081_v25 = vmul.f32 1.442695, %v1030_v5  ;;  %v1860_v33 = vpop.eup %1859  ;;  %vm3950_vm2 = vcmp.ne.s32.totalorder %v2536_v50, %v2448_v13  ;;  %v654_v0 = vpop.f32.mrf.mxu3  ;;  %v1381_v4 = vld [vmem:[%s2233_s27 + $0x10] sm:$0xff] }
 0x11d   : > { %vm2701_vm7 = vmand %vm2676_vm15, %vm3945_vm8  ;;  %vm3951_vm15 = vcmp.eq.s32.totalorder %v2577_v6, %v2444_v11  ;;  %v1241_v35 = vmul.f32 1.442695, %v1190_v10  ;;  %v1307_v39 = vadd.f32 %v1124_v29, %v1123_v18  ;;  %v1689_v30 = vadd.f32 -1.0, %v565_v21  ;;  %v1862_v40 = vpop.eup %1861  ;;  %v2806_v18 = vpop.permute.xlu1 %699 }
 0x11e   : > { %vm2713_vm9 = vmand %vm2583_vm10, %vm3935_vm3  ;;  %v1284_v37 = vsel %vm2701_vm7, %v1858_v23, 0.0  ;;  %vm3954_vm10 = vcmp.ne.s32.totalorder %v2536_v50, %v2455_v17  ;;  %vm3955_vm0 = vcmp.eq.s32.totalorder %v2577_v6, %v2453_v16  ;;  %v1109_v43 = vsel %vm2595_vm6, %v1860_v33, 0.0  ;;  %v1864_v46 = vpop.eup %1863  ;;  %v568_v42 = vpop.f32.mrf.mxu0 }
 0x11f   : > { %vm2727_vm11 = vmand %vm3951_vm15, %vm3950_vm2  ;;  %1871 = vpow2.f32 %v1081_v25  ;;  %v1323_v44 = vadd.f32 %v1284_v37, %v1283_v19  ;;  %v1015_v45 = vmul.f32 -32.0, %v983_v32  ;;  %v1269_v47 = vsel %vm2620_vm14, %v1862_v40, 0.0 }
 0x120   : > { %vm2740_vm3 = vmand %vm3955_vm0, %vm3954_vm10  ;;  %1873 = vpow2.f32 %v1241_v35  ;;  %v1355_v20 = vadd.f32 %v1339_v27, %v1307_v39  ;;  %v1175_v48 = vmul.f32 32.0, %v1689_v30  ;;  %v1866_v52 = vpop.eup %1865  ;;  %v1110_v31 = vsel %vm2630_vm12, %v1864_v46, 0.0 }
 0x121   : > { %vm3958_vm8 = vmmov %vm3951_vm15  ;;  %v1403_v55 = vadd.f32 %v1387_v36, %v1323_v44  ;;  %v1051_v57 = vmul.f32 1.442695, %v1015_v45  ;;  %v984_v58 = vadd.f32 1.0, %v630_v26  ;;  %v1868_v51 = vpop.eup %1867  ;;  %v1270_v6 = vsel %vm2713_vm9, %v1866_v52, 0.0  ;;  %v1340_v44 = vld [vmem:[%s2231_s0 + $0x48] sm:$0xff] }
 0x122   : > { %vm2750_vm7 = vmxor %vm3958_vm8, %vm3889_vm13  ;;  %v1300_v61 = vadd.f32 %v1110_v31, %v1109_v43  ;;  %1371 = vst [vmem:[%s2231_s0 + $0x40] sm:$0xff] %v1355_v20  ;;  %v1211_v62 = vmul.f32 1.442695, %v1175_v48  ;;  %v1690_v63 = vadd.f32 -1.0, %v630_v26  ;;  %v2779_v1 = vpop.eup %1869  ;;  %vm3966_vm12 = vcmp.lt.s32.totalorder %v2455_v17, 600 }
 0x123   : > { %vm3961_vm6 = vmmov %vm3955_vm0  ;;  %v1316_v5 = vadd.f32 %v1270_v6, %v1269_v47  ;;  %1419 = vst [vmem:[%s2233_s27 + $0x40] sm:$0xff] %v1403_v55  ;;  %1875 = vpow2.f32 %v1051_v57  ;;  %v1016_v34 = vmul.f32 -32.0, %v984_v58  ;;  %v999_v8 = vadd.f32 1.0, %v589_v49 }
 0x124   : > { %vm2760_vm2 = vmxor %vm3961_vm6, %vm3889_vm13  ;;  %v1348_v15 = vadd.f32 %v1332_v53, %v1300_v61  ;;  %1877 = vpow2.f32 %v1211_v62  ;;  %v1176_v19 = vmul.f32 32.0, %v1690_v63  ;;  %v1705_v21 = vadd.f32 -1.0, %v589_v49  ;;  %v1388_v53 = vld [vmem:[%s2233_s27 + $0x48] sm:$0xff]  ;;  %v592_v63 = vpop.f32.mrf.mxu2 }
 0x125   : > { %vm2771_vm14 = vmand %vm2727_vm11, %vm3891_vm5  ;;  %v1872_v23 = vpop.eup %1871  ;;  %v1396_v24 = vadd.f32 %v1380_v38, %v1316_v5  ;;  %v1053_v25 = vmul.f32 1.442695, %v1016_v34  ;;  %v1031_v27 = vmul.f32 -32.0, %v999_v8  ;;  %v1000_v29 = vadd.f32 1.0, %v654_v0  ;;  %v1333_v38 = vld [vmem:[%s2231_s0 + $0x10] sm:$0xff]  ;;  %v2894_v60 = vpop.permute.xlu1 %711 }
 0x126   : > { %vm2785_vm15 = vmand %vm2740_vm3, %vm3966_vm12  ;;  %v1874_v32 = vpop.eup %1873  ;;  %v2816_v33 = vadd.s32 %v2440_v7, %v2470_v22  ;;  %1364 = vst [vmem:[%s2231_s0 + $0x8] sm:$0xff] %v1348_v15  ;;  %vm3974_vm3 = vcmp.ne.s32.totalorder %v2549_v56, %v2455_v17  ;;  %vm3975_vm8 = vcmp.eq.s32.totalorder %v2670_v59, %v2453_v16  ;;  %v1213_v12 = vmul.f32 1.442695, %v1176_v19  ;;  %v633_v8 = vpop.f32.mrf.mxu1 }
 0x127   : > { %vm2793_vm9 = vmand %vm2750_vm7, %vm3891_vm5  ;;  %v1191_v35 = vmul.f32 32.0, %v1705_v21  ;;  %v1706_v36 = vadd.f32 -1.0, %v654_v0  ;;  %1412 = vst [vmem:[%s2233_s27 + $0x8] sm:$0xff] %v1396_v24  ;;  %v2828_v37 = vadd.s32 %v2440_v7, %v2614_v28  ;;  %1879 = vpow2.f32 %v1053_v25 }
 0x128   : > { %vm3971_vm11 = vmmov %vm3966_vm12  ;;  %v1083_v56 = vmul.f32 1.442695, %v1031_v27  ;;  %v1032_v39 = vmul.f32 -32.0, %v1000_v29  ;;  %1881 = vpow2.f32 %v1213_v12  ;;  %v2856_v47 = vadd.s32 40, %v2442_v9 }
 0x129   : > { %vm2802_vm10 = vmand %vm2760_vm2, %vm3971_vm11  ;;  %v1243_v28 = vmul.f32 1.442695, %v1191_v35  ;;  %v1192_v41 = vmul.f32 32.0, %v1706_v36  ;;  %v1876_v43 = vpop.eup %1875  ;;  %v985_v58 = vadd.f32 1.0, %v568_v42  ;;  %v785_v62 = vadd.s32 96, %v2442_v9 }
 0x12a   : > { %vm865_vm0 = vmand %vm757_vm1, %vm831_vm4  ;;  %v1085_v46 = vmul.f32 1.442695, %v1032_v39  ;;  %v1878_v50 = vpop.eup %1877  ;;  %1883 = vpow2.f32 %v1083_v56  ;;  %v1111_v52 = vsel %vm2771_vm14, %v1876_v43, 0.0  ;;  %v1691_v34 = vadd.f32 -1.0, %v568_v42 }
 0x12b   : > { %vm866_vm7 = vmand %vm3975_vm8, %vm3974_vm3  ;;  %vm745_vm3 = vcmp.eq.s32.totalorder %v2806_v18, %v2444_v11  ;;  %v1245_v48 = vmul.f32 1.442695, %v1192_v41  ;;  %1885 = vpow2.f32 %v1243_v28  ;;  %v1271_v57 = vsel %vm2793_vm9, %v1878_v50, 0.0 }
 0x12c   : > { %vm2832_vm4 = vmand %vm865_vm0, %vm3891_vm5  ;;  %vm3984_vm0 = vcmp.lt.s32.totalorder %v2455_v17, 600  ;;  %1887 = vpow2.f32 %v1085_v46  ;;  %v1017_v5 = vmul.f32 -32.0, %v985_v58  ;;  %v986_v2 = vadd.f32 1.0, %v633_v8 }
 0x12d   : > { %vm3978_vm6 = vmmov %vm3971_vm11  ;;  %v1125_v40 = vsel %vm2832_vm4, %v1868_v51, 0.0  ;;  %vm821_vm11 = vcmp.ne.s32.totalorder %v2816_v33, %v2448_v13  ;;  %v1880_v31 = vpop.eup %1879  ;;  %1889 = vpow2.f32 %v1245_v48  ;;  %v1692_v21 = vadd.f32 -1.0, %v633_v8 }
 0x12e   : > { %vm2838_vm2 = vmand %vm866_vm7, %vm3978_vm6  ;;  %vm819_vm7 = vcmp.ne.s32.totalorder %v2828_v37, %v2448_v13  ;;  %vm746_vm6 = vcmp.eq.s32.totalorder %v2806_v18, %v2453_v16  ;;  %v1882_v51 = vpop.eup %1881  ;;  %v1112_v61 = vsel %vm2785_vm15, %v1880_v31, 0.0  ;;  %v1055_v27 = vmul.f32 1.442695, %v1017_v5 }
 0x12f   : > { %vm933_vm12 = vmxor %vm757_vm1, %vm3889_vm13  ;;  %v1126_v45 = vsel %vm2838_vm2, %v1872_v23, 0.0  ;;  %v1272_v0 = vsel %vm2802_vm10, %v1882_v51, 0.0  ;;  %v657_v23 = vpop.f32.mrf.mxu3  ;;  %v1177_v29 = vmul.f32 32.0, %v1691_v34  ;;  %v1001_v10 = vadd.f32 1.0, %v592_v63 }
 0x130   : > { %vm3981_vm1 = vmmov %vm3975_vm8  ;;  %v1308_v20 = vadd.f32 %v1126_v45, %v1125_v40  ;;  %v1317_v19 = vadd.f32 %v1272_v0, %v1271_v57  ;;  %v2900_v24 = vpop.eup %1883  ;;  %v1018_v35 = vmul.f32 -32.0, %v986_v2  ;;  %v1178_v36 = vmul.f32 32.0, %v1692_v21  ;;  %v2982_v57 = vpop.permute.xlu0 %726 }
 0x131   : > { %vm934_vm8 = vmxor %vm3981_vm1, %vm3889_vm13  ;;  %vm822_vm1 = vcmp.ne.s32.totalorder %v2816_v33, %v2455_v17  ;;  %vm748_vm13 = vcmp.eq.s32.totalorder %v2428_v3, %v2453_v16  ;;  %v1707_v22 = vadd.f32 -1.0, %v592_v63  ;;  %1891 = vpow2.f32 %v1055_v27  ;;  %v724_v0 = vpop.permute.xlu2 %723  ;;  %v595_v27 = vpop.f32.mrf.mxu2 }
 0x132   : > { %vm2872_vm2 = vmand %vm933_vm12, %vm3891_vm5  ;;  %v1356_v49 = vadd.f32 %v1340_v44, %v1308_v20  ;;  %v1397_v12 = vadd.f32 %v1381_v4, %v1317_v19  ;;  %v1215_v39 = vmul.f32 1.442695, %v1177_v29  ;;  %v1033_v30 = vmul.f32 -32.0, %v1001_v10  ;;  %v571_v4 = vpop.f32.mrf.mxu0  ;;  %v636_v19 = vpop.f32.mrf.mxu1 }
 0x133   : > { %vm966_vm4 = vmand %vm934_vm8, %vm3984_vm0  ;;  %v1285_v59 = vsel %vm2872_vm2, %v2779_v1, 0.0  ;;  %v1301_v1 = vadd.f32 %v1112_v61, %v1111_v52  ;;  %v1002_v40 = vadd.f32 1.0, %v657_v23  ;;  %v2922_v43 = vadd.s32 %v2440_v7, %v785_v62  ;;  %v1341_v52 = vld [vmem:[%s2231_s0 + $0x50] sm:$0xff] }
 0x134   : > { %v1286_v55 = vsel %vm966_vm4, %v1874_v32, 0.0  ;;  %1372 = vst [vmem:[%s2231_s0 + $0x48] sm:$0xff] %v1356_v49  ;;  %v2902_v32 = vpop.eup %1885  ;;  %vm2916_vm14 = vmand %vm745_vm3, %vm819_vm7  ;;  %v1057_v44 = vmul.f32 1.442695, %v1018_v35  ;;  %v1217_v45 = vmul.f32 1.442695, %v1178_v36  ;;  %vm3987_vm15 = vcmp.eq.s32.totalorder %v2428_v3, %v2444_v11 }
 0x135   : > { %v1324_v6 = vadd.f32 %v1286_v55, %v1285_v59  ;;  %v1349_v25 = vadd.f32 %v1333_v38, %v1301_v1  ;;  %v2905_v56 = vpop.eup %1887  ;;  %1413 = vst [vmem:[%s2233_s27 + $0x10] sm:$0xff] %v1397_v12  ;;  %v1193_v46 = vmul.f32 32.0, %v1707_v22  ;;  %vm2930_vm9 = vmand %vm3987_vm15, %vm821_vm11  ;;  %vm3990_vm10 = vcmp.ne.s32.totalorder %v2828_v37, %v2455_v17  ;;  %v2998_v38 = vpop.permute.xlu1 %720  ;;  %v1334_v12 = vld [vmem:[%s2231_s0 + $0x18] sm:$0xff] }
 0x136   : > { %v2908_v28 = vpop.eup %1889  ;;  %vm2940_vm12 = vmand %vm746_vm6, %vm3990_vm10  ;;  %1893 = vpow2.f32 %v1215_v39  ;;  %v1087_v48 = vmul.f32 1.442695, %v1033_v30  ;;  %v1034_v26 = vmul.f32 -32.0, %v1002_v40  ;;  %v1708_v59 = vadd.f32 -1.0, %v657_v23  ;;  %v1382_v39 = vld [vmem:[%s2233_s27 + $0x18] sm:$0xff] }
 0x137   : > { %v1404_v15 = vadd.f32 %v1388_v53, %v1324_v6  ;;  %1365 = vst [vmem:[%s2231_s0 + $0x10] sm:$0xff] %v1349_v25  ;;  %vm3993_vm0 = vmmov 1   ;;  %vm3994_vm11 = vmmov %vm3987_vm15  ;;  %v2953_v37 = vadd.s32 48, %v2442_v9  ;;  %1895 = vpow2.f32 %v1057_v44  ;;  %v1892_v62 = vpop.eup %1891  ;;  %v1342_v6 = vld [vmem:[%s2231_s0 + $0x58] sm:$0xff] }
 0x138   : > { %vm2948_vm8 = vmxor %vm3994_vm11, %vm3993_vm0  ;;  %v1247_v42 = vmul.f32 1.442695, %v1193_v46  ;;  %v784_v31 = vadd.s32 88, %v2442_v9  ;;  %1897 = vpow2.f32 %v1217_v45  ;;  %v1089_v58 = vmul.f32 1.442695, %v1034_v26 }
 0x139   : > { %1420 = vst [vmem:[%s2233_s27 + $0x48] sm:$0xff] %v1404_v15  ;;  %vm2959_vm7 = vmxor %vm745_vm3, %vm3993_vm0  ;;  %v1194_v33 = vmul.f32 32.0, %v1708_v59  ;;  %v783_v51 = vadd.s32 80, %v2442_v9  ;;  %1899 = vpow2.f32 %v1087_v48  ;;  %vm4007_vm11 = vcmp.lt.s32.totalorder %v2455_v17, 600 }
 0x13a   : > { %vm2970_vm4 = vmand %vm748_vm13, %vm822_vm1  ;;  %v801_v61 = vadd.s32 %v2440_v7, %v784_v31  ;;  %1901 = vpow2.f32 %v1089_v58  ;;  %vm761_vm1 = vcmp.eq.s32.totalorder %v724_v0, %v2444_v11  ;;  %v987_v25 = vadd.f32 1.0, %v571_v4  ;;  %v660_v58 = vpop.f32.mrf.mxu3 }
 0x13b   : > { %vm2978_vm3 = vmand %vm2916_vm14, %vm3891_vm5  ;;  %v1249_v63 = vmul.f32 1.442695, %v1194_v33  ;;  %v3013_v1 = vadd.s32 %v2440_v7, %v783_v51  ;;  %1903 = vpow2.f32 %v1247_v42  ;;  %v1693_v3 = vadd.f32 -1.0, %v571_v4  ;;  %v1383_v4 = vld [vmem:[%s2233_s27 + $0x20] sm:$0xff] }
 0x13c   : > { %vm2989_vm2 = vmxor %vm746_vm6, %vm3993_vm0  ;;  %vm835_vm14 = vcmp.ne.s32.totalorder %v801_v61, %v2448_v13  ;;  %v1894_v34 = vpop.eup %1893  ;;  %v1113_v15 = vsel %vm2978_vm3, %v1892_v62, 0.0  ;;  %v1019_v30 = vmul.f32 -32.0, %v987_v25  ;;  %v988_v40 = vadd.f32 1.0, %v636_v19 }
 0x13d   : > { %vm3004_vm6 = vmand %vm2959_vm7, %vm3891_vm5  ;;  %v1896_v2 = vpop.eup %1895  ;;  %1905 = vpow2.f32 %v1249_v63  ;;  %vm4016_vm3 = vcmp.lt.s32.totalorder %v2448_v13, 600  ;;  %v1179_v45 = vmul.f32 32.0, %v1693_v3  ;;  %v1694_v46 = vadd.f32 -1.0, %v636_v19  ;;  %v639_v19 = vpop.f32.mrf.mxu1 }
 0x13e   : > { %vm3019_vm7 = vmand %vm2940_vm12, %vm4007_vm11  ;;  %vm836_vm12 = vcmp.ne.s32.totalorder %v801_v61, %v2455_v17  ;;  %v1273_v23 = vsel %vm3004_vm6, %v1894_v34, 0.0  ;;  %v1898_v29 = vpop.eup %1897  ;;  %v1003_v20 = vadd.f32 1.0, %v595_v27  ;;  %v1059_v31 = vmul.f32 1.442695, %v1019_v30 }
 0x13f   : > { %vm4010_vm15 = vmmov %vm4007_vm11  ;;  %v1114_v10 = vsel %vm3019_vm7, %v1896_v2, 0.0  ;;  %v1900_v35 = vpop.eup %1899  ;;  %v1020_v55 = vmul.f32 -32.0, %v988_v40  ;;  %v1219_v18 = vmul.f32 1.442695, %v1179_v45  ;;  %v1180_v63 = vmul.f32 32.0, %v1694_v46 }
 0x140   : > { %vm3030_vm5 = vmand %vm2989_vm2, %vm4010_vm15  ;;  %vm833_vm2 = vcmp.ne.s32.totalorder %v3013_v1, %v2448_v13  ;;  %v1302_v22 = vadd.f32 %v1114_v10, %v1113_v15  ;;  %vm4015_vm15 = vcmp.eq.s32.totalorder %v724_v0, %v2453_v16  ;;  %v1902_v48 = vpop.eup %1901  ;;  %1907 = vpow2.f32 %v1059_v31  ;;  %v1389_v15 = vld [vmem:[%s2233_s27 + $0x50] sm:$0xff] }
 0x141   : > { %vm3043_vm10 = vmxor %vm748_vm13, %vm3993_vm0  ;;  %v1274_v36 = vsel %vm3030_vm5, %v1898_v29, 0.0  ;;  %v1904_v33 = vpop.eup %1903  ;;  %v1061_v34 = vmul.f32 1.442695, %v1020_v55  ;;  %v1035_v8 = vmul.f32 -32.0, %v1003_v20  ;;  %1909 = vpow2.f32 %v1219_v18 }
 0x142   : > { %vm869_vm13 = vmand %vm761_vm1, %vm835_vm14  ;;  %v1318_v41 = vadd.f32 %v1274_v36, %v1273_v23  ;;  %v1350_v59 = vadd.f32 %v1334_v12, %v1302_v22  ;;  %v1221_v2 = vmul.f32 1.442695, %v1180_v63  ;;  %v1709_v21 = vadd.f32 -1.0, %v595_v27  ;;  %v1390_v27 = vld [vmem:[%s2233_s27 + $0x58] sm:$0xff]  ;;  %v663_v46 = vpop.f32.mrf.mxu3  ;;  %v1391_v63 = vld [vmem:[%s2233_s27 + $0x60] sm:$0xff] }
 0x143   : > { %vm870_vm7 = vmand %vm4015_vm15, %vm836_vm12  ;;  %v1906_v49 = vpop.eup %1905  ;;  %1911 = vpow2.f32 %v1061_v34  ;;  %v1091_v10 = vmul.f32 1.442695, %v1035_v8  ;;  %v3181_v36 = vadd.s32 %v2440_v7, %v2856_v47  ;;  %v3192_v30 = vadd.s32 %v2440_v7, %v2953_v37 }
 0x144   : > { %vm3073_vm6 = vmand %vm869_vm13, %vm4016_vm3  ;;  %v1398_v51 = vadd.f32 %v1382_v39, %v1318_v41  ;;  %1366 = vst [vmem:[%s2231_s0 + $0x18] sm:$0xff] %v1350_v59  ;;  %1913 = vpow2.f32 %v1221_v2  ;;  %v1195_v3 = vmul.f32 32.0, %v1709_v21  ;;  %v1710_v39 = vadd.f32 -1.0, %v660_v58 }
 0x145   : > { %vm4019_vm5 = vmmov %vm4016_vm3  ;;  %v1129_v42 = vsel %vm3073_vm6, %v1900_v35, 0.0  ;;  %1915 = vpow2.f32 %v1091_v10  ;;  %v780_v40 = vadd.s32 56, %v2442_v9  ;;  %v786_v55 = vadd.s32 104, %v2442_v9 }
 0x146   : > { %vm3081_vm12 = vmand %vm2930_vm9, %vm4019_vm5  ;;  %1414 = vst [vmem:[%s2233_s27 + $0x18] sm:$0xff] %v1398_v51  ;;  %v1908_v44 = vpop.eup %1907  ;;  %v1196_v20 = vmul.f32 32.0, %v1710_v39 }
 0x147   : > { %vm4022_vm15 = vmmov %vm4007_vm11  ;;  %v1910_v59 = vpop.eup %1909 }
 0x148   : > { %vm3087_vm14 = vmand %vm870_vm7, %vm4022_vm15  ;;  %vm4034_vm7 = vcmp.eq.s32.totalorder %v2982_v57, %v2444_v11  ;;  %v1253_v51 = vmul.f32 1.442695, %v1196_v20  ;;  %v1343_v20 = vld [vmem:[%s2231_s0 + $0x60] sm:$0xff] }
 0x149   : > { %vm4025_vm9 = vmmov %vm4016_vm3  ;;  %v1130_v62 = vsel %vm3087_vm14, %v1902_v48, 0.0  ;;  %vm4037_vm14 = vcmp.eq.s32.totalorder %v724_v0, %v2453_v16  ;;  %v787_v48 = vadd.s32 112, %v2442_v9 }
 0x14a   : > { %vm3097_vm3 = vmand %vm2948_vm8, %vm4025_vm9  ;;  %v1310_v53 = vadd.f32 %v1130_v62, %v1129_v42  ;;  %v1335_v62 = vld [vmem:[%s2231_s0 + $0x20] sm:$0xff] }
 0x14b   : > { %vm3105_vm13 = vmxor %vm761_vm1, %vm3993_vm0  ;;  %vm4033_vm1 = vcmp.ne.s32.totalorder %v2922_v43, %v2448_v13  ;;  %v1275_v26 = vsel %vm3097_vm3, %v1910_v59, 0.0  ;;  %v1696_v59 = vadd.f32 -1.0, %v639_v19 }
 0x14c   : > { %vm4030_vm8 = vmmov %vm4007_vm11  ;;  %v1358_v29 = vadd.f32 %v1342_v6, %v1310_v53  ;;  %v574_v6 = vpop.f32.mrf.mxu0 }
 0x14d   : > { %vm3115_vm6 = vmand %vm2970_vm4, %vm4030_vm8  ;;  %v989_v47 = vadd.f32 1.0, %v574_v6 }
 0x14e   : > { %vm3125_vm5 = vmand %vm4034_vm7, %vm4033_vm1  ;;  %vm4042_vm1 = vcmp.eq.s32.totalorder %v2982_v57, %v2453_v16  ;;  %1374 = vst [vmem:[%s2231_s0 + $0x58] sm:$0xff] %v1358_v29  ;;  %v3290_v29 = vadd.s32 %v2440_v7, %v780_v40  ;;  %v3323_v40 = vpop.permute.xlu1 %729 }
 0x14f   : > { %vm938_vm15 = vmxor %vm4037_vm14, %vm3993_vm0  ;;  %vm4045_vm14 = vcmp.lt.s32.totalorder %v2448_v13, 600 }
 0x150   : > { %vm4038_vm4 = vmmov %vm4030_vm8  ;;  %vm4041_vm8 = vcmp.ne.s32.totalorder %v2922_v43, %v2455_v17  ;;  %v1004_v43 = vadd.f32 1.0, %v660_v58  ;;  %v1912_v58 = vpop.eup %1911 }
 0x151   : > { %vm3137_vm9 = vmand %vm3043_vm10, %vm4038_vm4  ;;  %vm4048_vm10 = vcmp.eq.s32.totalorder %v2982_v57, %v2444_v11  ;;  %v1914_v61 = vpop.eup %1913  ;;  %v1116_v50 = vsel %vm3115_vm6, %v1912_v58, 0.0  ;;  %vm825_vm6 = vcmp.ne.s32.totalorder %v3192_v30, %v2448_v13 }
 0x152   : > { %vm3147_vm7 = vmand %vm4042_vm1, %vm4041_vm8  ;;  %vm4051_vm8 = vcmp.lt.s32.totalorder %v2455_v17, 600  ;;  %v1036_v35 = vmul.f32 -32.0, %v1004_v43  ;;  %v1916_v18 = vpop.eup %1915  ;;  %v1276_v34 = vsel %vm3137_vm9, %v1914_v61, 0.0  ;;  %v3287_v43 = vadd.s32 %v2440_v7, %v787_v48 }
 0x153   : > { %vm3156_vm11 = vmand %vm3105_vm13, %vm4045_vm14  ;;  %vm4052_vm13 = vcmp.eq.s32.totalorder %v2998_v38, %v2444_v11  ;;  %v1319_v21 = vadd.f32 %v1276_v34, %v1275_v26  ;;  %v1021_v48 = vmul.f32 -32.0, %v989_v47  ;;  %v1385_v26 = vld [vmem:[%s2233_s27 + $0x30] sm:$0xff] }
 0x154   : > { %vm3164_vm4 = vmxor %vm4048_vm10, %vm3993_vm0  ;;  %v1289_v25 = vsel %vm3156_vm11, %v1904_v33, 0.0  ;;  %vm4053_vm11 = vcmp.ne.s32.totalorder %v3013_v1, %v2455_v17  ;;  %v1251_v1 = vmul.f32 1.442695, %v1195_v3  ;;  %v1093_v41 = vmul.f32 1.442695, %v1036_v35  ;;  %v577_v34 = vpop.f32.mrf.mxu0  ;;  %v1384_v33 = vld [vmem:[%s2233_s27 + $0x28] sm:$0xff] }
 0x155   : > { %vm970_vm1 = vmand %vm938_vm15, %vm4051_vm8  ;;  %vm4054_vm15 = vcmp.eq.s32.totalorder %v2998_v38, %v2453_v16  ;;  %v3319_v35 = vadd.s32 120, %v2442_v9 }
 0x156   : > { %v1290_v12 = vsel %vm970_vm1, %v1906_v49, 0.0  ;;  %vm867_vm14 = vmand %vm4052_vm13, %vm833_vm2  ;;  %vm4055_vm2 = vcmp.lt.s32.totalorder %v2448_v13, 600  ;;  %vm4058_vm1 = vcmp.lt.s32.totalorder %v2455_v17, 600  ;;  %1917 = vpow2.f32 %v1251_v1 }
 0x157   : > { %v1326_v22 = vadd.f32 %v1290_v12, %v1289_v25  ;;  %vm868_vm10 = vmand %vm4054_vm15, %vm4053_vm11  ;;  %vm4064_vm15 = vcmp.eq.s32.totalorder %v2450_v14, %v2444_v11  ;;  %1919 = vpow2.f32 %v1093_v41  ;;  %v598_v25 = vpop.f32.mrf.mxu2  ;;  %v3304_v12 = vadd.s32 %v2440_v7, %v786_v55 }
 0x158   : > { %vm3197_vm8 = vmand %vm867_vm14, %vm4055_vm2  ;;  %vm4061_vm14 = vcmp.eq.s32.totalorder %v2998_v38, %v2444_v11  ;;  %vm4067_vm2 = vcmp.eq.s32.totalorder %v2998_v38, %v2453_v16  ;;  %1921 = vpow2.f32 %v1253_v51  ;;  %v1711_v58 = vadd.f32 -1.0, %v598_v25 }
 0x159   : > { %v1406_v45 = vadd.f32 %v1390_v27, %v1326_v22  ;;  %vm3203_vm13 = vmand %vm868_vm10, %vm4058_vm1  ;;  %v1127_v37 = vsel %vm3197_vm8, %v2900_v24, 0.0  ;;  %v1115_v24 = vsel %vm3081_vm12, %v1908_v44, 0.0  ;;  %vm823_vm12 = vcmp.ne.s32.totalorder %v3181_v36, %v2448_v13  ;;  %v3301_v27 = vpop.permute.xlu2 %732 }
 0x15a   : > { %vm3216_vm11 = vmxor %vm4061_vm14, %vm3993_vm0  ;;  %v1128_v31 = vsel %vm3203_vm13, %v2905_v56, 0.0  ;;  %vm824_vm1 = vcmp.ne.s32.totalorder %v3181_v36, %v2455_v17  ;;  %vm750_vm13 = vcmp.eq.s32.totalorder %v2450_v14, %v2453_v16  ;;  %vm4068_vm14 = vcmp.lt.s32.totalorder %v2448_v13, 600 }
 0x15b   : > { %vm3230_vm10 = vmxor %vm4064_vm15, %vm3993_vm0  ;;  %1422 = vst [vmem:[%s2233_s27 + $0x58] sm:$0xff] %v1406_v45  ;;  %v1309_v56 = vadd.f32 %v1128_v31, %v1127_v37  ;;  %vm4071_vm15 = vcmp.lt.s32.totalorder %v2455_v17, 600  ;;  %v1303_v8 = vadd.f32 %v1116_v50, %v1115_v24  ;;  %v1399_v22 = vadd.f32 %v1383_v4, %v1319_v21  ;;  %v642_v21 = vpop.f32.mrf.mxu1  ;;  %v666_v50 = vpop.f32.mrf.mxu3 }
 0x15c   : > { %vm936_vm8 = vmxor %vm4067_vm2, %vm3993_vm0  ;;  %v1918_v3 = vpop.eup %1917  ;;  %v1695_v44 = vadd.f32 -1.0, %v574_v6  ;;  %v990_v45 = vadd.f32 1.0, %v639_v19  ;;  %v1063_v51 = vmul.f32 1.442695, %v1021_v48  ;;  %v1182_v6 = vmul.f32 32.0, %v1696_v59 }
 0x15d   : > { %vm3251_vm3 = vmand %vm3216_vm11, %vm4068_vm14  ;;  %v1357_v53 = vadd.f32 %v1341_v52, %v1309_v56  ;;  %vm751_vm11 = vcmp.eq.s32.totalorder %v2546_v54, %v2444_v11  ;;  %v1920_v1 = vpop.eup %1919  ;;  %1415 = vst [vmem:[%s2233_s27 + $0x20] sm:$0xff] %v1399_v22  ;;  %v1005_v52 = vadd.f32 1.0, %v598_v25  ;;  %v1006_v38 = vadd.f32 1.0, %v663_v46 }
 0x15e   : > { %vm3260_vm2 = vmand %vm936_vm8, %vm4071_vm15  ;;  %v1287_v49 = vsel %vm3251_vm3, %v2902_v32, 0.0  ;;  %vm826_vm3 = vcmp.ne.s32.totalorder %v3192_v30, %v2455_v17  ;;  %v1181_v24 = vmul.f32 32.0, %v1695_v44  ;;  %v1022_v55 = vmul.f32 -32.0, %v990_v45  ;;  %v1922_v56 = vpop.eup %1921  ;;  %v1392_v30 = vld [vmem:[%s2233_s27 + $0x68] sm:$0xff] }
 0x15f   : > { %vm4074_vm8 = vmmov %vm4068_vm14  ;;  %v1288_v2 = vsel %vm3260_vm2, %v2908_v28, 0.0  ;;  %1373 = vst [vmem:[%s2231_s0 + $0x50] sm:$0xff] %v1357_v53  ;;  %v1351_v28 = vadd.f32 %v1335_v62, %v1303_v8  ;;  %v1037_v61 = vmul.f32 -32.0, %v1005_v52  ;;  %1923 = vpow2.f32 %v1063_v51 }
 0x160   : > { %vm3278_vm14 = vmand %vm3125_vm5, %vm4074_vm8  ;;  %v1325_v10 = vadd.f32 %v1288_v2, %v1287_v49  ;;  %v1223_v49 = vmul.f32 1.442695, %v1181_v24  ;;  %v1065_v53 = vmul.f32 1.442695, %v1022_v55  ;;  %v1225_v8 = vmul.f32 1.442695, %v1182_v6 }
 0x161   : > { %vm4077_vm9 = vmmov %vm4071_vm15  ;;  %vm752_vm15 = vcmp.eq.s32.totalorder %v2546_v54, %v2453_v16  ;;  %v1131_v39 = vsel %vm3278_vm14, %v1916_v18, 0.0  ;;  %1367 = vst [vmem:[%s2231_s0 + $0x20] sm:$0xff] %v1351_v28  ;;  %v1095_v4 = vmul.f32 1.442695, %v1037_v61  ;;  %v1197_v32 = vmul.f32 32.0, %v1711_v58 }
 0x162   : > { %vm3296_vm5 = vmand %vm3147_vm7, %vm4077_vm9  ;;  %v1405_v41 = vadd.f32 %v1389_v15, %v1325_v10  ;;  %1925 = vpow2.f32 %v1223_v49  ;;  %v1038_v15 = vmul.f32 -32.0, %v1006_v38  ;;  %v1712_v2 = vadd.f32 -1.0, %v663_v46 }
 0x163   : > { %vm4080_vm7 = vmmov %vm4074_vm8  ;;  %vm4083_vm8 = vcmp.eq.s32.totalorder %v2982_v57, %v2453_v16  ;;  %v1132_v57 = vsel %vm3296_vm5, %v1920_v1, 0.0  ;;  %1927 = vpow2.f32 %v1065_v53  ;;  %v991_v10 = vadd.f32 1.0, %v577_v34  ;;  %v1336_v53 = vld [vmem:[%s2231_s0 + $0x28] sm:$0xff] }
 0x164   : > { %vm3314_vm2 = vmand %vm3164_vm4, %vm4080_vm7  ;;  %1421 = vst [vmem:[%s2233_s27 + $0x50] sm:$0xff] %v1405_v41  ;;  %v1311_v31 = vadd.f32 %v1132_v57, %v1131_v39  ;;  %vm765_vm7 = vcmp.eq.s32.totalorder %v3323_v40, %v2444_v11  ;;  %v1697_v28 = vadd.f32 -1.0, %v577_v34  ;;  %1929 = vpow2.f32 %v1225_v8 }
 0x165   : > { %vm3329_vm4 = vmxor %vm4083_vm8, %vm3993_vm0  ;;  %v1291_v9 = vsel %vm3314_vm2, %v1918_v3, 0.0  ;;  %vm4088_vm2 = vcmp.eq.s32.totalorder %v2450_v14, %v2444_v11  ;;  %v601_v3 = vpop.f32.mrf.mxu2  ;;  %v1255_v22 = vmul.f32 1.442695, %v1197_v32  ;;  %v1097_v39 = vmul.f32 1.442695, %v1038_v15  ;;  %v1924_v57 = vpop.eup %1923 }
 0x166   : > { %vm3340_vm14 = vmxor %vm750_vm13, %vm3993_vm0  ;;  %v1359_v18 = vadd.f32 %v1343_v20, %v1311_v31  ;;  %v1198_v47 = vmul.f32 32.0, %v1712_v2  ;;  %1931 = vpow2.f32 %v1095_v4  ;;  %v1023_v23 = vmul.f32 -32.0, %v991_v10  ;;  %v580_v15 = vpop.f32.mrf.mxu0  ;;  %v645_v31 = vpop.f32.mrf.mxu1 }
 0x167   : > { %vm3358_vm8 = vmand %vm4088_vm2, %vm823_vm12  ;;  %v1183_v41 = vmul.f32 32.0, %v1697_v28  ;;  %1933 = vpow2.f32 %v1255_v22  ;;  %v1698_v46 = vadd.f32 -1.0, %v642_v21  ;;  %v1007_v37 = vadd.f32 1.0, %v601_v3 }
 0x168   : > { %vm3371_vm12 = vmand %vm3329_vm4, %vm4077_vm9  ;;  %vm4095_vm9 = vcmp.lt.s32.totalorder %v2448_v13, 600  ;;  %1375 = vst [vmem:[%s2231_s0 + $0x60] sm:$0xff] %v1359_v18  ;;  %v1257_v45 = vmul.f32 1.442695, %v1198_v47  ;;  %1935 = vpow2.f32 %v1097_v39  ;;  %v1067_v48 = vmul.f32 1.442695, %v1023_v23  ;;  %v1926_v42 = vpop.eup %1925 }
 0x169   : > { %vm3385_vm4 = vmand %vm750_vm13, %vm824_vm1  ;;  %v1292_v62 = vsel %vm3371_vm12, %v1922_v56, 0.0  ;;  %v1227_v59 = vmul.f32 1.442695, %v1183_v41  ;;  %v1184_v55 = vmul.f32 32.0, %v1698_v46  ;;  %v1039_v58 = vmul.f32 -32.0, %v1007_v37  ;;  %v1928_v56 = vpop.eup %1927  ;;  %v1344_v23 = vld [vmem:[%s2231_s0 + $0x68] sm:$0xff] }
 0x16a   : > { %vm3396_vm5 = vmand %vm3230_vm10, %vm4095_vm9  ;;  %v1327_v14 = vadd.f32 %v1292_v62, %v1291_v9  ;;  %vm4101_vm10 = vcmp.lt.s32.totalorder %v2455_v17, 600  ;;  %v992_v9 = vadd.f32 1.0, %v642_v21  ;;  %1937 = vpow2.f32 %v1257_v45  ;;  %v1930_v62 = vpop.eup %1929  ;;  %v1345_v21 = vld [vmem:[%s2231_s0 + $0x70] sm:$0xff] }
 0x16b   : > { %vm4098_vm12 = vmmov %vm4095_vm9  ;;  %v1277_v6 = vsel %vm3396_vm5, %v1926_v42, 0.0  ;;  %1939 = vpow2.f32 %v1067_v48  ;;  %v1713_v38 = vadd.f32 -1.0, %v601_v3  ;;  %vm4135_vm5 = vcmp.eq.s32.totalorder %v3323_v40, %v2453_v16 }
 0x16c   : > { %vm3408_vm2 = vmand %vm3358_vm8, %vm4098_vm12  ;;  %v1407_v5 = vadd.f32 %v1391_v63, %v1327_v14  ;;  %v1024_v52 = vmul.f32 -32.0, %v992_v9  ;;  %1941 = vpow2.f32 %v1227_v59  ;;  %v1229_v34 = vmul.f32 1.442695, %v1184_v55  ;;  %v1932_v14 = vpop.eup %1931 }
 0x16d   : > { %vm3416_vm9 = vmand %vm3340_vm14, %vm4101_vm10  ;;  %v1117_v24 = vsel %vm3408_vm2, %v1924_v57, 0.0  ;;  %vm4128_vm2 = vcmp.ne.s32.totalorder %v3304_v12, %v2448_v13  ;;  %v1099_v36 = vmul.f32 1.442695, %v1039_v58  ;;  %v1199_v32 = vmul.f32 32.0, %v1713_v38  ;;  %v1934_v2 = vpop.eup %1933 }
 0x16e   : > { %vm4104_vm8 = vmmov %vm4101_vm10  ;;  %1423 = vst [vmem:[%s2233_s27 + $0x60] sm:$0xff] %v1407_v5  ;;  %v1069_v61 = vmul.f32 1.442695, %v1024_v52  ;;  %v1278_v8 = vsel %vm3416_vm9, %v1930_v62, 0.0  ;;  %v1008_v10 = vadd.f32 1.0, %v666_v50  ;;  %v1936_v28 = vpop.eup %1935  ;;  %v1714_v22 = vadd.f32 -1.0, %v666_v50 }
 0x16f   : > { %vm3425_vm12 = vmand %vm3385_vm4, %vm4104_vm8  ;;  %vm4113_vm8 = vcmp.lt.s32.totalorder %v2448_v13, 600  ;;  %v1320_v25 = vadd.f32 %v1278_v8, %v1277_v6  ;;  %v1259_v0 = vmul.f32 1.442695, %v1199_v32  ;;  %v993_v9 = vadd.f32 1.0, %v580_v15  ;;  %v1337_v62 = vld [vmem:[%s2231_s0 + $0x30] sm:$0xff]  ;;  %v669_v32 = vpop.f32.mrf.mxu3  ;;  %v1386_v8 = vld [vmem:[%s2233_s27 + $0x38] sm:$0xff] }
 0x170   : > { %vm3435_vm14 = vmand %vm751_vm11, %vm825_vm6  ;;  %v1118_v49 = vsel %vm3425_vm12, %v1928_v56, 0.0  ;;  %1943 = vpow2.f32 %v1069_v61  ;;  %vm4141_vm12 = vcmp.ne.s32.totalorder %v3290_v29, %v2448_v13  ;;  %v1938_v39 = vpop.eup %1937  ;;  %v1040_v41 = vmul.f32 -32.0, %v1008_v10 }
 0x171   : > { %vm3443_vm4 = vmxor %vm751_vm11, %vm3993_vm0  ;;  %v1304_v4 = vadd.f32 %v1118_v49, %v1117_v24  ;;  %1945 = vpow2.f32 %v1229_v34  ;;  %v1400_v47 = vadd.f32 %v1384_v33, %v1320_v25  ;;  %v1940_v44 = vpop.eup %1939  ;;  %v1699_v37 = vadd.f32 -1.0, %v580_v15 }
 0x172   : > { %vm3454_vm6 = vmand %vm752_vm15, %vm826_vm3  ;;  %1947 = vpow2.f32 %v1099_v36  ;;  %v1942_v57 = vpop.eup %1941  ;;  %v1101_v52 = vmul.f32 1.442695, %v1040_v41  ;;  %v1025_v42 = vmul.f32 -32.0, %v993_v9  ;;  %v1700_v19 = vadd.f32 -1.0, %v645_v31 }
 0x173   : > { %vm3466_vm13 = vmand %vm3435_vm14, %vm4113_vm8  ;;  %v1352_v3 = vadd.f32 %v1336_v53, %v1304_v4  ;;  %1949 = vpow2.f32 %v1259_v0  ;;  %1416 = vst [vmem:[%s2233_s27 + $0x28] sm:$0xff] %v1400_v47  ;;  %v1185_v36 = vmul.f32 32.0, %v1699_v37  ;;  %v1716_v9 = vadd.f32 -1.0, %v669_v32 }
 0x174   : > { %vm3474_vm3 = vmxor %vm752_vm15, %vm3993_vm0  ;;  %vm4122_vm15 = vcmp.eq.s32.totalorder %v3301_v27, %v2444_v11  ;;  %v1119_v59 = vsel %vm3466_vm13, %v1940_v44, 0.0  ;;  %1951 = vpow2.f32 %v1101_v52  ;;  %v1071_v63 = vmul.f32 1.442695, %v1025_v42 }
 0x175   : > { %vm4118_vm10 = vmmov %vm4113_vm8  ;;  %vm4121_vm8 = vcmp.ne.s32.totalorder %v3287_v43, %v2448_v13  ;;  %1368 = vst [vmem:[%s2231_s0 + $0x28] sm:$0xff] %v1352_v3 }
 0x176   : > { %vm3482_vm14 = vmand %vm3443_vm4, %vm4118_vm10  ;;  %vm4125_vm4 = vcmp.lt.s32.totalorder %v2455_v17, 600  ;;  %v1944_v24 = vpop.eup %1943 }
 0x177   : > { %vm3492_vm11 = vmand %vm4122_vm15, %vm4121_vm8  ;;  %vm842_vm8 = vcmp.ne.s32.totalorder %v3287_v43, %v2455_v17  ;;  %v1279_v51 = vsel %vm3482_vm14, %v1942_v57, 0.0  ;;  %v1946_v61 = vpop.eup %1945  ;;  %vm4162_vm14 = vcmp.eq.s32.totalorder %v3301_v27, %v2444_v11 }
 0x178   : > { %vm3502_vm10 = vmand %vm3454_vm6, %vm4125_vm4  ;;  %v1948_v49 = vpop.eup %1947 }
 0x179   : > { %vm3516_vm1 = vmand %vm765_vm7, %vm4128_vm2  ;;  %vm4134_vm2 = vcmp.ne.s32.totalorder %v3304_v12, %v2455_v17  ;;  %v1120_v50 = vsel %vm3502_vm10, %v1944_v24, 0.0  ;;  %v3643_v12 = vadd.s32 %v2440_v7, %v3319_v35  ;;  %v1950_v15 = vpop.eup %1949  ;;  %v1231_v35 = vmul.f32 1.442695, %v1185_v36 }
 0x17a   : > { %vm4131_vm6 = vmmov %vm4125_vm4  ;;  %v1305_v34 = vadd.f32 %v1120_v50, %v1119_v59  ;;  %v1952_v47 = vpop.eup %1951  ;;  %v1393_v59 = vld [vmem:[%s2233_s27 + $0x70] sm:$0xff] }
 0x17b   : > { %vm3526_vm4 = vmand %vm3474_vm3, %vm4131_vm6  ;;  %vm4138_vm3 = vcmp.lt.s32.totalorder %v2448_v13, 600 }
 0x17c   : > { %vm3536_vm15 = vmand %vm4135_vm5, %vm4134_vm2  ;;  %vm4142_vm2 = vcmp.eq.s32.totalorder %v2894_v60, %v2444_v11  ;;  %v1280_v54 = vsel %vm3526_vm4, %v1946_v61, 0.0  ;;  %v1353_v43 = vadd.f32 %v1337_v62, %v1305_v34 }
 0x17d   : > { %vm3547_vm6 = vmand %vm3516_vm1, %vm4138_vm3  ;;  %vm4145_vm1 = vcmp.lt.s32.totalorder %v2455_v17, 600  ;;  %v1321_v4 = vadd.f32 %v1280_v54, %v1279_v51 }
 0x17e   : > { %vm3560_vm5 = vmand %vm4142_vm2, %vm4141_vm12  ;;  %v1133_v5 = vsel %vm3547_vm6, %v1932_v14, 0.0  ;;  %v604_v14 = vpop.f32.mrf.mxu2  ;;  %1369 = vst [vmem:[%s2231_s0 + $0x30] sm:$0xff] %v1353_v43 }
 0x17f   : > { %vm3568_vm9 = vmand %vm3536_vm15, %vm4145_vm1  ;;  %vm4148_vm15 = vcmp.eq.s32.totalorder %v3323_v40, %v2453_v16  ;;  %v1200_v40 = vmul.f32 32.0, %v1714_v22  ;;  %v1715_v10 = vadd.f32 -1.0, %v604_v14  ;;  %v1186_v22 = vmul.f32 32.0, %v1700_v19 }
 0x180   : > { %vm941_vm3 = vmxor %vm765_vm7, %vm3993_vm0  ;;  %v1134_v1 = vsel %vm3568_vm9, %v1936_v28, 0.0  ;;  %vm4149_vm7 = vcmp.lt.s32.totalorder %v2448_v13, 600  ;;  %vm4155_vm9 = vcmp.ne.s32.totalorder %v3290_v29, %v2455_v17 }
 0x181   : > { %vm942_vm6 = vmxor %vm4148_vm15, %vm3993_vm0  ;;  %v1312_v46 = vadd.f32 %v1134_v1, %v1133_v5  ;;  %v1261_v6 = vmul.f32 1.442695, %v1200_v40  ;;  %v1009_v5 = vadd.f32 1.0, %v604_v14  ;;  %v736_v1 = vpop.permute.xlu0 %735  ;;  %v1201_v41 = vmul.f32 32.0, %v1715_v10 }
 0x182   : > { %vm3587_vm12 = vmand %vm941_vm3, %vm4149_vm7  ;;  %vm4156_vm3 = vcmp.eq.s32.totalorder %v2894_v60, %v2453_v16  ;;  %v1233_v40 = vmul.f32 1.442695, %v1186_v22 }
 0x183   : > { %vm4152_vm2 = vmmov %vm4145_vm1  ;;  %v1293_v48 = vsel %vm3587_vm12, %v1934_v2, 0.0  ;;  %v1360_v56 = vadd.f32 %v1344_v23, %v1312_v46  ;;  %1953 = vpow2.f32 %v1261_v6  ;;  %v994_v2 = vadd.f32 1.0, %v645_v31 }
 0x184   : > { %vm3594_vm1 = vmand %vm942_vm6, %vm4152_vm2  ;;  %1955 = vpow2.f32 %v1071_v63  ;;  %v1041_v23 = vmul.f32 -32.0, %v1009_v5  ;;  %v1263_v42 = vmul.f32 1.442695, %v1201_v41  ;;  %v1202_v6 = vmul.f32 32.0, %v1716_v9 }
 0x185   : > { %vm3609_vm15 = vmand %vm4156_vm3, %vm4155_vm9  ;;  %v1294_v58 = vsel %vm3594_vm1, %v1938_v39, 0.0  ;;  %1376 = vst [vmem:[%s2231_s0 + $0x68] sm:$0xff] %v1360_v56  ;;  %v1026_v0 = vmul.f32 -32.0, %v994_v2  ;;  %v1010_v39 = vadd.f32 1.0, %v669_v32  ;;  %vm4177_vm3 = vcmp.lt.s32.totalorder %v2455_v17, 600  ;;  %v1346_v2 = vld [vmem:[%s2231_s0 + $0x78] sm:$0xff] }
 0x186   : > { %vm4159_vm13 = vmmov %vm4149_vm7  ;;  %v1328_v38 = vadd.f32 %v1294_v58, %v1293_v48  ;;  %1957 = vpow2.f32 %v1231_v35  ;;  %v1103_v52 = vmul.f32 1.442695, %v1041_v23  ;;  %v1265_v50 = vmul.f32 1.442695, %v1202_v6 }
 0x187   : > { %vm3622_vm6 = vmand %vm3492_vm11, %vm4159_vm13  ;;  %vm4165_vm11 = vcmp.eq.s32.totalorder %v3301_v27, %v2453_v16  ;;  %v1401_v27 = vadd.f32 %v1385_v26, %v1321_v4  ;;  %v1073_v46 = vmul.f32 1.442695, %v1026_v0  ;;  %v1042_v37 = vmul.f32 -32.0, %v1010_v39  ;;  %v1338_v26 = vld [vmem:[%s2231_s0 + $0x38] sm:$0xff] }
 0x188   : > { %vm3633_vm7 = vmxor %vm4162_vm14, %vm3993_vm0  ;;  %v1408_v18 = vadd.f32 %v1392_v30, %v1328_v38  ;;  %v1135_v33 = vsel %vm3622_vm6, %v1948_v49, 0.0  ;;  %vm4179_vm14 = vcmp.eq.s32.totalorder %v2894_v60, %v2444_v11 }
 0x189   : > { %vm3651_vm10 = vmand %vm4165_vm11, %vm842_vm8  ;;  %1417 = vst [vmem:[%s2233_s27 + $0x30] sm:$0xff] %v1401_v27  ;;  %v1954_v44 = vpop.eup %1953  ;;  %1959 = vpow2.f32 %v1073_v46  ;;  %v1105_v56 = vmul.f32 1.442695, %v1042_v37  ;;  %v1394_v27 = vld [vmem:[%s2233_s27 + $0x78] sm:$0xff] }
 0x18a   : > { %vm4168_vm4 = vmmov %vm4165_vm11  ;;  %1424 = vst [vmem:[%s2233_s27 + $0x68] sm:$0xff] %v1408_v18  ;;  %vm4182_vm11 = vcmp.eq.s32.totalorder %v2894_v60, %v2453_v16  ;;  %v1956_v30 = vpop.eup %1955  ;;  %1961 = vpow2.f32 %v1233_v40 }
 0x18b   : > { %vm3661_vm12 = vmxor %vm4168_vm4, %vm3993_vm0  ;;  %vm769_vm4 = vcmp.eq.s32.totalorder %v736_v1, %v2444_v11  ;;  %1963 = vpow2.f32 %v1103_v52 }
 0x18c   : > { %vm4171_vm8 = vmmov %vm4159_vm13  ;;  %v1958_v29 = vpop.eup %1957  ;;  %1965 = vpow2.f32 %v1263_v42 }
 0x18d   : > { %vm3669_vm2 = vmand %vm3633_vm7, %vm4171_vm8  ;;  %1967 = vpow2.f32 %v1105_v56 }
 0x18e   : > { %vm4174_vm1 = vmmov %vm4171_vm8  ;;  %v1295_v3 = vsel %vm3669_vm2, %v1950_v15, 0.0  ;;  %vm843_vm2 = vcmp.ne.s32.totalorder %v3643_v12, %v2448_v13  ;;  %1969 = vpow2.f32 %v1265_v50 }
 0x18f   : > { %vm3678_vm9 = vmand %vm3560_vm5, %vm4174_vm1  ;;  %v1960_v31 = vpop.eup %1959 }
 0x190   : > { %vm912_vm13 = vmand %vm3651_vm10, %vm4177_vm3  ;;  %v1121_v63 = vsel %vm3678_vm9, %v1956_v30, 0.0  ;;  %v1962_v53 = vpop.eup %1961 }
 0x191   : > { %vm4178_vm5 = vmmov %vm4177_vm3  ;;  %v1136_v45 = vsel %vm912_vm13, %v1952_v47, 0.0  ;;  %vm770_vm13 = vcmp.eq.s32.totalorder %v736_v1, %v2453_v16  ;;  %v1964_v11 = vpop.eup %1963 }
 0x192   : > { %vm976_vm6 = vmand %vm3661_vm12, %vm4178_vm5  ;;  %v1313_v48 = vadd.f32 %v1136_v45, %v1135_v33  ;;  %v1966_v18 = vpop.eup %1965 }
 0x193   : > { %vm3699_vm7 = vmxor %vm4179_vm14, %vm3993_vm0  ;;  %v1296_v20 = vsel %vm976_vm6, %v1954_v44, 0.0  ;;  %v1968_v32 = vpop.eup %1967 }
 0x194   : > { %vm3708_vm10 = vmxor %vm4182_vm11, %vm3993_vm0  ;;  %v1329_v58 = vadd.f32 %v1296_v20, %v1295_v3  ;;  %v1361_v60 = vadd.f32 %v1345_v21, %v1313_v48  ;;  %v1970_v7 = vpop.eup %1969 }
 0x195   : > { %vm4185_vm12 = vmmov %vm4177_vm3 }
 0x196   : > { %vm3717_vm8 = vmand %vm3609_vm15, %vm4185_vm12  ;;  %vm844_vm15 = vcmp.ne.s32.totalorder %v3643_v12, %v2455_v17  ;;  %v1409_v55 = vadd.f32 %v1393_v59, %v1329_v58  ;;  %1377 = vst [vmem:[%s2231_s0 + $0x70] sm:$0xff] %v1361_v60 }
 0x197   : > { %vm3727_vm3 = vmand %vm3699_vm7, %vm4174_vm1  ;;  %v1122_v34 = vsel %vm3717_vm8, %v1960_v31, 0.0 }
 0x198   : > { %vm3738_vm6 = vmand %vm3708_vm10, %vm4178_vm5  ;;  %1425 = vst [vmem:[%s2233_s27 + $0x70] sm:$0xff] %v1409_v55  ;;  %v1281_v49 = vsel %vm3727_vm3, %v1958_v29, 0.0  ;;  %v1306_v12 = vadd.f32 %v1122_v34, %v1121_v63 }
 0x199   : > { %vm877_vm14 = vmand %vm769_vm4, %vm843_vm2  ;;  %v1282_v14 = vsel %vm3738_vm6, %v1962_v53, 0.0 }
 0x19a   : > { %vm3748_vm7 = vmand %vm770_vm13, %vm844_vm15  ;;  %v1322_v4 = vadd.f32 %v1282_v14, %v1281_v49  ;;  %v1354_v13 = vadd.f32 %v1338_v26, %v1306_v12 }
 0x19b   : > { %vm945_vm11 = vmxor %vm769_vm4, %vm3993_vm0 }
 0x19c   : > { %vm4194_vm9 = vmmov %vm4174_vm1  ;;  %v1402_v43 = vadd.f32 %v1386_v8, %v1322_v4  ;;  %1370 = vst [vmem:[%s2231_s0 + $0x38] sm:$0xff] %v1354_v13 }
 0x19d   : > { %vm3769_vm10 = vmand %vm877_vm14, %vm4194_vm9 }
 0x19e   : > { %vm3779_vm4 = vmxor %vm770_vm13, %vm3993_vm0  ;;  %v1137_v33 = vsel %vm3769_vm10, %v1964_v11, 0.0  ;;  %1418 = vst [vmem:[%s2233_s27 + $0x38] sm:$0xff] %v1402_v43 }
 0x19f   : > { %vm4199_vm12 = vmmov %vm4174_vm1 }
 0x1a0   : > { %vm3790_vm8 = vmand %vm945_vm11, %vm4199_vm12 }
 0x1a1   : > { %vm4202_vm0 = vmmov %vm4178_vm5  ;;  %v1297_v15 = vsel %vm3790_vm8, %v1966_v18, 0.0 }
 0x1a2   : > { %vm914_vm2 = vmand %vm3748_vm7, %vm4202_vm0 }
 0x1a3   : > { %vm4203_vm1 = vmmov %vm4202_vm0  ;;  %v1138_v35 = vsel %vm914_vm2, %v1968_v32, 0.0 }
 0x1a4   : > { %vm978_vm3 = vmand %vm3779_vm4, %vm4203_vm1  ;;  %v1314_v25 = vadd.f32 %v1138_v35, %v1137_v33 }
 0x1a5   : > { %v1298_v19 = vsel %vm978_vm3, %v1970_v7, 0.0 }
 0x1a6   : > { %v1330_v17 = vadd.f32 %v1298_v19, %v1297_v15  ;;  %v1362_v5 = vadd.f32 %v1346_v2, %v1314_v25 }
 0x1a8   : > { %v1410_v10 = vadd.f32 %v1394_v27, %v1330_v17  ;;  %1378 = vst [vmem:[%s2231_s0 + $0x78] sm:$0xff] %v1362_v5 }
 0x1aa   : > { %1426 = vst [vmem:[%s2233_s27 + $0x78] sm:$0xff] %v1410_v10 }
 0x1ab   : > { %1998 = shalt.err (!%p1995_p10)
}
 0x1ac   : > { %s2102_s0 = smov 128   ;;  %s2103_s27 = smov 8  }
 0x1ad   : > { %1759 = dma.vmem_to_hbm [thread:$0]  (%p2183_p3), %s1446_s8, 2048, %s1448_s26, %s1428_s16, %s2102_s0, %s2102_s0, %s2103_s27  }
 0x1ae   : > { %s1433_s12 = scalar_lea.sflag [#allocation5], %s2204_s10  ;;  %s2013_s13 = sshra.s32 %s1465_s7, 4  ;;  %s2014_s13 = int_to_ptr.hbm [resolvable:$true] %s2013_s13 }
 0x1af   : > { %s2015_s14 = scalar_lea.hbm %s2014_s13, 128  ;;  %s2019_s23 = scalar_lea.hbm %s3884_s5, 768 }
 0x1b0   : > { %p2016_p11 = scmp.ne.s32.totalorder %s2014_s13, %s2015_s14  ;;  %p2020_p0 = scmp.lt.s32.totalorder %s2014_s13, %s3884_s5 }
 0x1b1   : > { %p2021_p1 = scmp.lt.s32.totalorder %s2019_s23, %s2015_s14 }
 0x1b2   : > { %p2017_p12 = pnand %p2016_p11, %p2183_p3 }
 0x1b3   : > { %p2022_p2 = por %p2021_p1, %p2020_p0 }
 0x1b4   : > { %p2018_p13 = pneg %p2017_p12 }
 0x1b6   : > { %p2023_p4 = pnand %p2022_p2, %p2018_p13 }
 0x1b8   : > { %2026 = shalt.err (!%p2023_p4)
}
 0x1b9   : > { %1760 = dma.vmem_to_hbm [thread:$0]  (%p2183_p3), %s3817_s11, 2048, %s1465_s7, %s1433_s12, %s2102_s0, %s2102_s0, %s2103_s27  }
 0x1ba PF: > { %p1770_p5 = scmp.ge.s32.totalorder %s2097_s25, 2  ;;  %s1479_s10 = sand.u32 1, %s2069_s18  }
 0x1bb   : > { %s1480_s26 = scalar_lea.sflag [#allocation3], %s1479_s10 }
 0x1bc   : > { %p1764_p6 = pnand %p1770_p5, %p2193_p9 }
 0x1be   : > { %p1765_p7 = pneg %p1764_p6 }
 0x1c0   : > { %2060 = dma.done.wait (%p1765_p7), %s1480_s26, 2048  }
 0x1c1   : > { %2062 = vsyncadd (%p1765_p7), %s1480_s26, 4294965248  ;;  %s1490_s8 = scalar_lea.sflag [#allocation5], %s1479_s10 }
 0x1c2   : > { %2064 = dma.done.wait (%p1765_p7), %s1490_s8, 2048  }
 0x1c3   : > { %2066 = vsyncadd (%p1765_p7), %s1490_s8, 4294965248  ;;  %s22_s25 = sadd.s32 1, %s2097_s25   ;;  %s4204_s21 = sld [smem:[#allocation8_spill]] }
 0x1c4   : > { %p19_p8 = scmp.ge.s32.totalorder %s22_s25, 20   ;;  %s4205_s22 = sld [smem:[#allocation9_spill]] }
 0x1c5   : > { %s4206_s23 = sld [smem:[#allocation10_spill]]  ;;  %s4208_s18 = smov %s2073_s19 }
 0x1c6   : > { %s4207_s24 = sld [smem:[#allocation11_spill]]  ;;  %s4209_s19 = smov %s2077_s20 }
 0x1c7   : > { %s4210_s20 = smov %s2201_s9  ;;  %21 = sbr.rel (!%p19_p8) target bundleno = 9 (0x9), region = 101 }
 0x1cc   :  { %1496 = vsyncpa [#allocation3], 1 }
 0x1cd   :  { %1498 = vsyncpa [#allocation3 + $0x1], 1 }
 0x1ce   :  { %1499 = vsyncpa [#allocation5], 1 }
 0x1cf   :  { %1501 = vsyncpa [#allocation5 + $0x1], 1 }

</bundles_post_ra>
